<compile_context>
chip_gen: v7x
topology: tpu7x:2x2x1
jax: 0.10.0
libtpu: 0.0.40
codegen_flags: <defaults>
</compile_context>

<pallas_src>
import jax
import jax.numpy as jnp
from jax.experimental import pallas as pl
from jax.experimental.pallas import tpu as pltpu


def _leaky_relu(v, slope=0.05):
    return jnp.where(v > 0, v, slope * v)


def _round_up(x, m):
    return (x + m - 1) // m * m


def link_layer_edge_kernel(x1_ref, e12_ref, x2_ref,
                           w1_ref, w2_ref, w3_ref, b0_ref,
                           m1_ref, bm1_ref, m2_ref, bm2_ref,
                           o_ref):
    cdt = w1_ref.dtype  # compute dtype of the MXU operands (bf16)

    # Stage 1 (folded): leaky( cat(lnx1(x1), lne12(e12), lnx2(x2)) @ M0 + b )
    z = jnp.dot(x1_ref[...].astype(cdt), w1_ref[...],
                preferred_element_type=jnp.float32)
    z = z + jnp.dot(e12_ref[...].astype(cdt), w2_ref[...],
                    preferred_element_type=jnp.float32)
    z = z + jnp.dot(x2_ref[...].astype(cdt), w3_ref[...],
                    preferred_element_type=jnp.float32)
    h = _leaky_relu(z + b0_ref[...])

    # Stage 2: Linear(3H, 3H) + leaky_relu(0.05)
    h = jnp.dot(h.astype(cdt), m1_ref[...],
                preferred_element_type=jnp.float32)
    h = _leaky_relu(h + bm1_ref[...])

    # Stage 3: Linear(3H, 1) -- f32 VPU mul + lane reduce (no activation,
    # because use_softmax=True in the reference module).
    out = jnp.sum(h * m2_ref[...], axis=-1, keepdims=True) + bm2_ref[...]
    o_ref[...] = out.astype(o_ref.dtype)


def link_layer_edge(x1, e12, x2, params, *, tile_b=512,
                    compute_dtype=jnp.bfloat16):
    """Pallas implementation of LinkLayerEdge.forward (useBN=False).

    x1:  [B, node_dim]        e12: [B, edge_dim]       x2: [B, other_node_dim]
    params: transposed-vs-torch layout:
        w_x1 [node_dim, H], b_x1 [H], w_e12 [edge_dim, H], b_e12 [H],
        w_x2 [other_node_dim, H], b_x2 [H],
        w_m0 [3H, 3H], b_m0 [3H], w_m1 [3H, 3H], b_m1 [3H],
        w_m2 [3H, 1], b_m2 [1]
    returns: [B, 1] float32
    """
    B, node_dim = x1.shape
    edge_dim = e12.shape[1]
    other_dim = x2.shape[1]
    H = params["w_x1"].shape[1]
    H3 = 3 * H

    # ---- Fold the three branch Linears + concat + first map_linear layer ----
    m0 = params["w_m0"]
    w1f = params["w_x1"] @ m0[0 * H:1 * H, :]             # [node_dim, 3H]
    w2f = params["w_e12"] @ m0[1 * H:2 * H, :]            # [edge_dim, 3H]
    w3f = params["w_x2"] @ m0[2 * H:3 * H, :]             # [other_dim, 3H]
    b0f = (jnp.concatenate([params["b_x1"], params["b_e12"], params["b_x2"]])
           @ m0 + params["b_m0"])                          # [3H]

    # MXU operands in bf16, biases / final projection row stay f32.
    w1c = w1f.astype(compute_dtype)
    w2c = w2f.astype(compute_dtype)
    w3c = w3f.astype(compute_dtype)
    m1c = params["w_m1"].astype(compute_dtype)
    b0r = b0f.reshape(1, H3).astype(jnp.float32)
    bm1r = params["b_m1"].reshape(1, H3).astype(jnp.float32)
    m2r = params["w_m2"].reshape(1, H3).astype(jnp.float32)
    bm2r = params["b_m2"].reshape(1, 1).astype(jnp.float32)

    # ---- Tiling: large batch tiles, tail padded, >=2 grid steps if possible --
    tile_b = max(8, _round_up(min(tile_b, _round_up(pl.cdiv(B, 2), 8)
                                  if B >= 16 else _round_up(B, 8)), 8))
    pad = (-B) % tile_b
    if pad:
        x1 = jnp.pad(x1, ((0, pad), (0, 0)))
        e12 = jnp.pad(e12, ((0, pad), (0, 0)))
        x2 = jnp.pad(x2, ((0, pad), (0, 0)))
    Bp = B + pad
    grid = (Bp // tile_b,)

    const = lambda i: (0, 0)
    row = lambda i: (i, 0)

    out = pl.pallas_call(
        link_layer_edge_kernel,
        out_shape=jax.ShapeDtypeStruct((Bp, 1), jnp.float32),
        grid_spec=pltpu.PrefetchScalarGridSpec(
            num_scalar_prefetch=0,
            grid=grid,
            in_specs=[
                pl.BlockSpec((tile_b, node_dim), row),
                pl.BlockSpec((tile_b, edge_dim), row),
                pl.BlockSpec((tile_b, other_dim), row),
                pl.BlockSpec((node_dim, H3), const),
                pl.BlockSpec((edge_dim, H3), const),
                pl.BlockSpec((other_dim, H3), const),
                pl.BlockSpec((1, H3), const),
                pl.BlockSpec((H3, H3), const),
                pl.BlockSpec((1, H3), const),
                pl.BlockSpec((1, H3), const),
                pl.BlockSpec((1, 1), const),
            ],
            out_specs=pl.BlockSpec((tile_b, 1), row),
        ),
        compiler_params=pltpu.CompilerParams(
            dimension_semantics=("parallel",)),
    )(x1, e12, x2, w1c, w2c, w3c, b0r, m1c, bm1r, m2r, bm2r)

    return out[:B]


def init_params(key, node_dim, edge_dim, other_node_dim, hidden_dim):
    """Deterministic synthetic parameters (torch Linear weights pre-transposed)."""
    H3 = 3 * hidden_dim
    ks = jax.random.split(key, 12)
    s = 0.1
    n = lambda k, shape: s * jax.random.normal(k, shape, jnp.float32)
    return {
        "w_x1": n(ks[0], (node_dim, hidden_dim)),  "b_x1": n(ks[1], (hidden_dim,)),
        "w_e12": n(ks[2], (edge_dim, hidden_dim)), "b_e12": n(ks[3], (hidden_dim,)),
        "w_x2": n(ks[4], (other_node_dim, hidden_dim)), "b_x2": n(ks[5], (hidden_dim,)),
        "w_m0": n(ks[6], (H3, H3)), "b_m0": n(ks[7], (H3,)),
        "w_m1": n(ks[8], (H3, H3)), "b_m1": n(ks[9], (H3,)),
        "w_m2": n(ks[10], (H3, 1)), "b_m2": n(ks[11], (1,)),
    }


def reference_forward(x1, e12, x2, p):
    """Pure-JAX f32 reference matching the PyTorch module (useBN=False)."""
    h1 = x1 @ p["w_x1"] + p["b_x1"]
    h2 = e12 @ p["w_e12"] + p["b_e12"]
    h3 = x2 @ p["w_x2"] + p["b_x2"]
    c = jnp.concatenate([h1, h2, h3], axis=1)
    h = _leaky_relu(c @ p["w_m0"] + p["b_m0"])
    h = _leaky_relu(h @ p["w_m1"] + p["b_m1"])
    return h @ p["w_m2"] + p["b_m2"]


if __name__ == "__main__":
    # Small shapes: B=1000 links, node_dim=16, edge_dim=8, other_node_dim=16,
    # hidden_dim=16 (module default) -> 3H=48.  B is deliberately not a
    # multiple of the tile so the padded-tail path is exercised.
    B, node_dim, edge_dim, other_node_dim, hidden_dim = 1000, 16, 8, 16, 16

    key = jax.random.PRNGKey(0)
    k1, k2, k3, kp = jax.random.split(key, 4)

    x1 = jax.random.normal(k1, (B, node_dim), jnp.float32)
    e12 = jax.random.normal(k2, (B, edge_dim), jnp.float32)
    x2 = jax.random.normal(k3, (B, other_node_dim), jnp.float32)
    params = init_params(kp, node_dim, edge_dim, other_node_dim, hidden_dim)

    out = link_layer_edge(x1, e12, x2, params, tile_b=512)
    out = jax.block_until_ready(out)

    ref = reference_forward(x1, e12, x2, params)
    assert out.shape == (B, 1)
    # bf16 MXU operands with f32 accumulation -> loosened tolerance vs f32 ref.
    assert jnp.allclose(out, ref, atol=3e-2, rtol=3e-2), "mismatch vs reference"

    print("KERNEL_OK")
</pallas_src>

<mosaic_0001>
module attributes {stable_mosaic.version = 11 : i64} {
  func.func @link_layer_edge_kernel(%arg0: i32, %arg1: memref<504x16xf32, #tpu.memory_space<vmem>>, %arg2: memref<504x8xf32, #tpu.memory_space<vmem>>, %arg3: memref<504x16xf32, #tpu.memory_space<vmem>>, %arg4: memref<16x48xbf16, #tpu.memory_space<vmem>>, %arg5: memref<8x48xbf16, #tpu.memory_space<vmem>>, %arg6: memref<16x48xbf16, #tpu.memory_space<vmem>>, %arg7: memref<1x48xf32, #tpu.memory_space<vmem>>, %arg8: memref<48x48xbf16, #tpu.memory_space<vmem>>, %arg9: memref<1x48xf32, #tpu.memory_space<vmem>>, %arg10: memref<1x48xf32, #tpu.memory_space<vmem>>, %arg11: memref<1x1xf32, #tpu.memory_space<vmem>>, %arg12: memref<504x1xf32, #tpu.memory_space<vmem>>) attributes {dimension_semantics = [#tpu.dimension_semantics<parallel>], iteration_bounds = array<i64: 2>, scalar_prefetch = 0 : i64, scratch_operands = 0 : i64, tpu.core_type = #tpu.core_type<tc>, window_params = [{transform_indices = @transform_0, window_bounds = array<i64: 504, 16>}, {transform_indices = @transform_1, window_bounds = array<i64: 504, 8>}, {transform_indices = @transform_2, window_bounds = array<i64: 504, 16>}, {pipeline_mode = #tpu.pipeline_mode<synchronous>, transform_indices = @transform_3, window_bounds = array<i64: 16, 48>}, {pipeline_mode = #tpu.pipeline_mode<synchronous>, transform_indices = @transform_4, window_bounds = array<i64: 8, 48>}, {pipeline_mode = #tpu.pipeline_mode<synchronous>, transform_indices = @transform_5, window_bounds = array<i64: 16, 48>}, {pipeline_mode = #tpu.pipeline_mode<synchronous>, transform_indices = @transform_6, window_bounds = array<i64: 1, 48>}, {pipeline_mode = #tpu.pipeline_mode<synchronous>, transform_indices = @transform_7, window_bounds = array<i64: 48, 48>}, {pipeline_mode = #tpu.pipeline_mode<synchronous>, transform_indices = @transform_8, window_bounds = array<i64: 1, 48>}, {pipeline_mode = #tpu.pipeline_mode<synchronous>, transform_indices = @transform_9, window_bounds = array<i64: 1, 48>}, {pipeline_mode = #tpu.pipeline_mode<synchronous>, transform_indices = @transform_10, window_bounds = array<i64: 1, 1>}, {transform_indices = @transform_11, window_bounds = array<i64: 504, 1>}]} {
    %c0 = arith.constant 0 : index
    %c0_0 = arith.constant 0 : index
    %0 = vector.load %arg1[%c0, %c0_0] : memref<504x16xf32, #tpu.memory_space<vmem>>, vector<504x16xf32>
    %1 = arith.truncf %0 : vector<504x16xf32> to vector<504x16xbf16>
    %c0_1 = arith.constant 0 : index
    %c0_2 = arith.constant 0 : index
    %2 = vector.load %arg4[%c0_1, %c0_2] : memref<16x48xbf16, #tpu.memory_space<vmem>>, vector<16x48xbf16>
    %cst = arith.constant dense<0.000000e+00> : vector<504x48xf32>
    %3 = tpu.matmul %1, %2, %cst {dimension_numbers = #tpu.dot_dimension_numbers<[1], [0], [0], [1], [0, 0, 1, 1], [], []>} : vector<504x16xbf16>, vector<16x48xbf16>, vector<504x48xf32> -> vector<504x48xf32>
    %c0_3 = arith.constant 0 : index
    %c0_4 = arith.constant 0 : index
    %4 = vector.load %arg2[%c0_3, %c0_4] : memref<504x8xf32, #tpu.memory_space<vmem>>, vector<504x8xf32>
    %5 = arith.truncf %4 : vector<504x8xf32> to vector<504x8xbf16>
    %c0_5 = arith.constant 0 : index
    %c0_6 = arith.constant 0 : index
    %6 = vector.load %arg5[%c0_5, %c0_6] : memref<8x48xbf16, #tpu.memory_space<vmem>>, vector<8x48xbf16>
    %cst_7 = arith.constant dense<0.000000e+00> : vector<504x48xf32>
    %7 = tpu.matmul %5, %6, %cst_7 {dimension_numbers = #tpu.dot_dimension_numbers<[1], [0], [0], [1], [0, 0, 1, 1], [], []>} : vector<504x8xbf16>, vector<8x48xbf16>, vector<504x48xf32> -> vector<504x48xf32>
    %8 = arith.addf %3, %7 : vector<504x48xf32>
    %c0_8 = arith.constant 0 : index
    %c0_9 = arith.constant 0 : index
    %9 = vector.load %arg3[%c0_8, %c0_9] : memref<504x16xf32, #tpu.memory_space<vmem>>, vector<504x16xf32>
    %10 = arith.truncf %9 : vector<504x16xf32> to vector<504x16xbf16>
    %c0_10 = arith.constant 0 : index
    %c0_11 = arith.constant 0 : index
    %11 = vector.load %arg6[%c0_10, %c0_11] : memref<16x48xbf16, #tpu.memory_space<vmem>>, vector<16x48xbf16>
    %cst_12 = arith.constant dense<0.000000e+00> : vector<504x48xf32>
    %12 = tpu.matmul %10, %11, %cst_12 {dimension_numbers = #tpu.dot_dimension_numbers<[1], [0], [0], [1], [0, 0, 1, 1], [], []>} : vector<504x16xbf16>, vector<16x48xbf16>, vector<504x48xf32> -> vector<504x48xf32>
    %13 = arith.addf %8, %12 : vector<504x48xf32>
    %c0_13 = arith.constant 0 : index
    %c0_14 = arith.constant 0 : index
    %14 = vector.load %arg7[%c0_13, %c0_14] : memref<1x48xf32, #tpu.memory_space<vmem>>, vector<1x48xf32>
    %15 = vector.broadcast %14 : vector<1x48xf32> to vector<504x48xf32>
    %16 = arith.addf %13, %15 : vector<504x48xf32>
    %cst_15 = arith.constant 0.000000e+00 : f32
    %17 = vector.broadcast %cst_15 : f32 to vector<504x48xf32>
    %18 = arith.cmpf ogt, %16, %17 : vector<504x48xf32>
    %cst_16 = arith.constant 5.000000e-02 : f32
    %19 = vector.broadcast %cst_16 : f32 to vector<504x48xf32>
    %20 = arith.mulf %19, %16 : vector<504x48xf32>
    %21 = arith.select %18, %16, %20 : vector<504x48xi1>, vector<504x48xf32>
    %22 = arith.truncf %21 : vector<504x48xf32> to vector<504x48xbf16>
    %c0_17 = arith.constant 0 : index
    %c0_18 = arith.constant 0 : index
    %23 = vector.load %arg8[%c0_17, %c0_18] : memref<48x48xbf16, #tpu.memory_space<vmem>>, vector<48x48xbf16>
    %cst_19 = arith.constant dense<0.000000e+00> : vector<504x48xf32>
    %24 = tpu.matmul %22, %23, %cst_19 {dimension_numbers = #tpu.dot_dimension_numbers<[1], [0], [0], [1], [0, 0, 1, 1], [], []>} : vector<504x48xbf16>, vector<48x48xbf16>, vector<504x48xf32> -> vector<504x48xf32>
    %c0_20 = arith.constant 0 : index
    %c0_21 = arith.constant 0 : index
    %25 = vector.load %arg9[%c0_20, %c0_21] : memref<1x48xf32, #tpu.memory_space<vmem>>, vector<1x48xf32>
    %26 = vector.broadcast %25 : vector<1x48xf32> to vector<504x48xf32>
    %27 = arith.addf %24, %26 : vector<504x48xf32>
    %cst_22 = arith.constant 0.000000e+00 : f32
    %28 = vector.broadcast %cst_22 : f32 to vector<504x48xf32>
    %29 = arith.cmpf ogt, %27, %28 : vector<504x48xf32>
    %cst_23 = arith.constant 5.000000e-02 : f32
    %30 = vector.broadcast %cst_23 : f32 to vector<504x48xf32>
    %31 = arith.mulf %30, %27 : vector<504x48xf32>
    %32 = arith.select %29, %27, %31 : vector<504x48xi1>, vector<504x48xf32>
    %c0_24 = arith.constant 0 : index
    %c0_25 = arith.constant 0 : index
    %33 = vector.load %arg10[%c0_24, %c0_25] : memref<1x48xf32, #tpu.memory_space<vmem>>, vector<1x48xf32>
    %34 = vector.broadcast %33 : vector<1x48xf32> to vector<504x48xf32>
    %35 = arith.mulf %32, %34 : vector<504x48xf32>
    %cst_26 = arith.constant dense<0.000000e+00> : vector<504xf32>
    %36 = vector.multi_reduction <add>, %35, %cst_26 [1] : vector<504x48xf32> to vector<504xf32>
    %37 = vector.shape_cast %36 : vector<504xf32> to vector<504x1xf32>
    %c0_27 = arith.constant 0 : index
    %c0_28 = arith.constant 0 : index
    %38 = vector.load %arg11[%c0_27, %c0_28] : memref<1x1xf32, #tpu.memory_space<vmem>>, vector<1x1xf32>
    %39 = vector.broadcast %38 : vector<1x1xf32> to vector<504x1xf32>
    %40 = arith.addf %37, %39 : vector<504x1xf32>
    %c0_29 = arith.constant 0 : index
    %c0_30 = arith.constant 0 : index
    %41 = vector.load %arg12[%c0_29, %c0_30] : memref<504x1xf32, #tpu.memory_space<vmem>>, vector<504x1xf32>
    tpu.vector_store %arg12[%c0_29, %c0_30], %40 {strides = array<i32>} : memref<504x1xf32, #tpu.memory_space<vmem>>, vector<504x1xf32>,
    return
  }
  func.func @transform_0(%arg0: i32) -> (i32, i32) {
    %c0_i32 = arith.constant 0 : i32
    %c0_i32_0 = arith.constant 0 : i32
    return %arg0, %c0_i32 : i32, i32
  }
  func.func @transform_1(%arg0: i32) -> (i32, i32) {
    %c0_i32 = arith.constant 0 : i32
    %c0_i32_0 = arith.constant 0 : i32
    return %arg0, %c0_i32 : i32, i32
  }
  func.func @transform_2(%arg0: i32) -> (i32, i32) {
    %c0_i32 = arith.constant 0 : i32
    %c0_i32_0 = arith.constant 0 : i32
    return %arg0, %c0_i32 : i32, i32
  }
  func.func @transform_3(%arg0: i32) -> (i32, i32) {
    %c0_i32 = arith.constant 0 : i32
    %c0_i32_0 = arith.constant 0 : i32
    %c0_i32_1 = arith.constant 0 : i32
    return %c0_i32, %c0_i32_0 : i32, i32
  }
  func.func @transform_4(%arg0: i32) -> (i32, i32) {
    %c0_i32 = arith.constant 0 : i32
    %c0_i32_0 = arith.constant 0 : i32
    %c0_i32_1 = arith.constant 0 : i32
    return %c0_i32, %c0_i32_0 : i32, i32
  }
  func.func @transform_5(%arg0: i32) -> (i32, i32) {
    %c0_i32 = arith.constant 0 : i32
    %c0_i32_0 = arith.constant 0 : i32
    %c0_i32_1 = arith.constant 0 : i32
    return %c0_i32, %c0_i32_0 : i32, i32
  }
  func.func @transform_6(%arg0: i32) -> (i32, i32) {
    %c0_i32 = arith.constant 0 : i32
    %c0_i32_0 = arith.constant 0 : i32
    %c0_i32_1 = arith.constant 0 : i32
    return %c0_i32, %c0_i32_0 : i32, i32
  }
  func.func @transform_7(%arg0: i32) -> (i32, i32) {
    %c0_i32 = arith.constant 0 : i32
    %c0_i32_0 = arith.constant 0 : i32
    %c0_i32_1 = arith.constant 0 : i32
    return %c0_i32, %c0_i32_0 : i32, i32
  }
  func.func @transform_8(%arg0: i32) -> (i32, i32) {
    %c0_i32 = arith.constant 0 : i32
    %c0_i32_0 = arith.constant 0 : i32
    %c0_i32_1 = arith.constant 0 : i32
    return %c0_i32, %c0_i32_0 : i32, i32
  }
  func.func @transform_9(%arg0: i32) -> (i32, i32) {
    %c0_i32 = arith.constant 0 : i32
    %c0_i32_0 = arith.constant 0 : i32
    %c0_i32_1 = arith.constant 0 : i32
    return %c0_i32, %c0_i32_0 : i32, i32
  }
  func.func @transform_10(%arg0: i32) -> (i32, i32) {
    %c0_i32 = arith.constant 0 : i32
    %c0_i32_0 = arith.constant 0 : i32
    %c0_i32_1 = arith.constant 0 : i32
    return %c0_i32, %c0_i32_0 : i32, i32
  }
  func.func @transform_11(%arg0: i32) -> (i32, i32) {
    %c0_i32 = arith.constant 0 : i32
    %c0_i32_0 = arith.constant 0 : i32
    return %arg0, %c0_i32 : i32, i32
  }
}

</mosaic_0001>

<bundles_post_ra>
// kernel: tpu_custom_call.1
= control target key start
LH: loop header
LB: loop body
LE: loop exit
PB: predicated region body
PF: predicated region fallthrough
CT: control target
= control target key end

     0   :  { %s4084_s19 = smov 0   ;;  %s5103_s0 = inlined_call_operand.vmem [shape: f32[1008,16], index: 0, kind: input, shape index: {}]   ;;  %s5104_s1 = inlined_call_operand.vmem [shape: f32[1008,8], index: 1, kind: input, shape index: {}]   ;;  %s5105_s2 = inlined_call_operand.vmem [shape: f32[1008,16], index: 2, kind: input, shape index: {}]   ;;  %s5106_s3 = inlined_call_operand.vmem [shape: bf16[16,48], index: 3, kind: input, shape index: {}]   ;;  %s5107_s4 = inlined_call_operand.vmem [shape: bf16[8,48], index: 4, kind: input, shape index: {}]   ;;  %s5108_s5 = inlined_call_operand.vmem [shape: bf16[16,48], index: 5, kind: input, shape index: {}]   ;;  %s5109_s6 = inlined_call_operand.vmem [shape: f32[1,48], index: 6, kind: input, shape index: {}]   ;;  %s5110_s7 = inlined_call_operand.vmem [shape: bf16[48,48], index: 7, kind: input, shape index: {}]   ;;  %s5111_s8 = inlined_call_operand.vmem [shape: f32[1,48], index: 8, kind: input, shape index: {}]   ;;  %s5112_s9 = inlined_call_operand.vmem [shape: f32[1,48], index: 9, kind: input, shape index: {}]   ;;  %s5113_s10 = inlined_call_operand.<no memory space> [shape: f32[1,1], index: 10, kind: input, shape index: {}]   ;;  %s5114_s11 = inlined_call_operand.vmem [shape: f32[1008,1], index: 11, kind: output, shape index: {}]  }
   0x1   :  { %v16_v0 = vstv %s5113_s10 }
   0x2   :  { %17 = vst [vmem:[#allocation2] sm:$0x1] %v16_v0 }
   0x3 LB: > { %s3329_s20 = sadd.s32 4294967295, %s4019_s19   ;;  %p3333_p0 = scmp.ge.s32.totalorder %s4019_s19, 1  ;;  %s4019_s19 = sphi %s4084_s19, %s23_s19  }
   0x4   : > { %p362_p1 = scmp.lt.s32.totalorder %s4019_s19, 3 }
   0x6   : > { %p363_p2 = pnand %p3333_p0, %p362_p1 }
   0x8   : > { %366 = sbr.rel (%p363_p2) target bundleno = 870 (0x366), region = 64 }
   0xf   : > { %v4008_v1 = vld [vmem:[%s5106_s3] sm:$0xff]   ;;  %vm727_vm0 = vcmask 1043456   ;;  %s412_s24 = smul.u32 63, %s3329_s20  ;;  %vm630_vm1 = vcmask 64512   ;;  %vm1025_vm2 = vcmask 130048   ;;  %vm2282_vm7 = vcmask 392192  }
  0x10   : > { %v629_v2 = vld [vmem:[%s5107_s4] sm:$0xf]  ;;  %3677 = vmatprep.subr.bf16.mxu0 %v4008_v1 }
  0x11   : > { %v4009_v3 = vld [vmem:[%s5108_s5] sm:$0xff]   ;;  %3999 = vmatprep.subr.msk.bf16.mxu1 %vm727_vm0, %v629_v2  ;;  %v729_v4 = vsel %vm727_vm0, %v629_v2, 0  ;;  %3678 = vmatpush3.bf16.msra.mxu0 %v4008_v1  ;;  %p413_p3 = scmp.lt.s32.totalorder %s412_s24, 125 }
  0x12   : > { %3612 = vmatpush3.bf16.msra.mxu1 %v729_v4  ;;  %3743 = vmatprep.subr.bf16.mxu0 %v4009_v3 }
  0x13   : > { %s5154_s24 = smov (!%p413_p3, %s412_s24), 125 }
  0x14   : > { %s4101_s27 = sshll.u32 %s5154_s24, 3 }
  0x15   : > { %s4107_s30 = scalar_lea.vmem %s5104_s1, %s4101_s27  ;;  %s4113_s14 = scalar_lea.vmem %s5103_s0, %s4101_s27 }
  0x16   : > { %v534_v5 = vld [vmem:[%s4107_s30] sm:$0xff]  ;;  %v535_v6 = vld [vmem:[%s4107_s30 + $0x8] sm:$0xff]  ;;  %v536_v10 = vld [vmem:[%s4107_s30 + $0x10] sm:$0xff]  ;;  %s4305_s20 = scalar_lea.vmem %s5105_s2, %s4101_s27 }
  0x17   : > { %v437_v7 = vld [vmem:[%s4113_s14] sm:$0xff]  ;;  %v597_v8 = vpack.c.bf16 %v535_v6, %v534_v5  ;;  %v438_v9 = vld [vmem:[%s4113_s14 + $0x8] sm:$0xff]  ;;  %v537_v11 = vld [vmem:[%s4107_s30 + $0x18] sm:$0xff] }
  0x18   : > { %v500_v12 = vpack.c.bf16 %v438_v9, %v437_v7  ;;  %v598_v13 = vpack.c.bf16 %v537_v11, %v536_v10  ;;  %v439_v14 = vld [vmem:[%s4113_s14 + $0x10] sm:$0xff]  ;;  %v440_v15 = vld [vmem:[%s4113_s14 + $0x18] sm:$0xff]  ;;  %v538_v16 = vld [vmem:[%s4107_s30 + $0x20] sm:$0xff] }
  0x19   : > { %3613 = vmatprep.mubr.msk.bf16.mxu1 %vm630_vm1, %v597_v8  ;;  %v501_v17 = vpack.c.bf16 %v440_v15, %v439_v14  ;;  %v539_v18 = vld [vmem:[%s4107_s30 + $0x28] sm:$0xff]  ;;  %v441_v19 = vld [vmem:[%s4113_s14 + $0x20] sm:$0xff]  ;;  %v540_v23 = vld [vmem:[%s4107_s30 + $0x30] sm:$0xff] }
  0x1a   : > { %v442_v20 = vld [vmem:[%s4113_s14 + $0x28] sm:$0xff]  ;;  %3679 = vmatprep.mubr.msk.bf16.mxu0 %vm1025_vm2, %v500_v12  ;;  %3614 = vmatmul.mubr.msk.bf16.vlgmr.msra.gmra.mrb[0].mxu1 %vm630_vm1, %v598_v13  ;;  %v599_v21 = vpack.c.bf16 %v539_v18, %v538_v16  ;;  %v541_v24 = vld [vmem:[%s4107_s30 + $0x38] sm:$0xff]  ;;  %v443_v25 = vld [vmem:[%s4113_s14 + $0x30] sm:$0xff] }
  0x1b   : > { %v502_v22 = vpack.c.bf16 %v442_v20, %v441_v19  ;;  %3680 = vmatmul.mubr.msk.bf16.vlgmr.msra.gmra.mrb[0].mxu0 %vm1025_vm2, %v501_v17  ;;  %v444_v26 = vld [vmem:[%s4113_s14 + $0x38] sm:$0xff]  ;;  %v542_v27 = vld [vmem:[%s4107_s30 + $0x40] sm:$0xff]  ;;  %v543_v28 = vld [vmem:[%s4107_s30 + $0x48] sm:$0xff]  ;;  %v600_v31 = vpack.c.bf16 %v541_v24, %v540_v23 }
  0x1c   : > { %3744 = vmatpush3.bf16.msra.mxu0 %v4009_v3  ;;  %3617 = vmatprep.mubr.msk.bf16.mxu1 %vm630_vm1, %v599_v21  ;;  %v445_v29 = vld [vmem:[%s4113_s14 + $0x40] sm:$0xff]  ;;  %v446_v30 = vld [vmem:[%s4113_s14 + $0x48] sm:$0xff]  ;;  %v503_v32 = vpack.c.bf16 %v444_v26, %v443_v25  ;;  %v601_v33 = vpack.c.bf16 %v543_v28, %v542_v27  ;;  %v544_v35 = vld [vmem:[%s4107_s30 + $0x50] sm:$0xff] }
  0x1d   : > { %3683 = vmatprep.mubr.msk.bf16.mxu0 %vm1025_vm2, %v502_v22  ;;  %v504_v34 = vpack.c.bf16 %v446_v30, %v445_v29  ;;  %v545_v36 = vld [vmem:[%s4107_s30 + $0x58] sm:$0xff]  ;;  %v447_v37 = vld [vmem:[%s4113_s14 + $0x50] sm:$0xff]  ;;  %v546_v39 = vld [vmem:[%s4107_s30 + $0x60] sm:$0xff] }
  0x1e   : > { %v448_v38 = vld [vmem:[%s4113_s14 + $0x58] sm:$0xff]  ;;  %v547_v40 = vld [vmem:[%s4107_s30 + $0x68] sm:$0xff]  ;;  %v449_v41 = vld [vmem:[%s4113_s14 + $0x60] sm:$0xff]  ;;  %v602_v43 = vpack.c.bf16 %v545_v36, %v544_v35 }
  0x1f   : > { %v450_v42 = vld [vmem:[%s4113_s14 + $0x68] sm:$0xff]  ;;  %v505_v44 = vpack.c.bf16 %v448_v38, %v447_v37  ;;  %v603_v45 = vpack.c.bf16 %v547_v40, %v546_v39  ;;  %v548_v47 = vld [vmem:[%s4107_s30 + $0x70] sm:$0xff]  ;;  %v549_v48 = vld [vmem:[%s4107_s30 + $0x78] sm:$0xff] }
  0x20   : > { %v506_v46 = vpack.c.bf16 %v450_v42, %v449_v41  ;;  %v451_v49 = vld [vmem:[%s4113_s14 + $0x70] sm:$0xff]  ;;  %v452_v50 = vld [vmem:[%s4113_s14 + $0x78] sm:$0xff]  ;;  %v550_v51 = vld [vmem:[%s4107_s30 + $0x80] sm:$0xff]  ;;  %v604_v55 = vpack.c.bf16 %v549_v48, %v548_v47 }
  0x21   : > { %v551_v52 = vld [vmem:[%s4107_s30 + $0x88] sm:$0xff]  ;;  %v453_v53 = vld [vmem:[%s4113_s14 + $0x80] sm:$0xff]  ;;  %v507_v56 = vpack.c.bf16 %v452_v50, %v451_v49  ;;  %v552_v59 = vld [vmem:[%s4107_s30 + $0x90] sm:$0xff] }
  0x22   : > { %3618 = vmatmul.mubr.msk.bf16.gmra.mrb[4].mxu1 %vm630_vm1, %v600_v31  ;;  %v454_v54 = vld [vmem:[%s4113_s14 + $0x88] sm:$0xff]  ;;  %v605_v57 = vpack.c.bf16 %v551_v52, %v550_v51  ;;  %v553_v60 = vld [vmem:[%s4107_s30 + $0x98] sm:$0xff]  ;;  %v455_v61 = vld [vmem:[%s4113_s14 + $0x90] sm:$0xff] }
  0x23   : > { %3684 = vmatmul.mubr.msk.bf16.gmra.mrb[4].mxu0 %vm1025_vm2, %v503_v32  ;;  %3621 = vmatprep.mubr.msk.bf16.mxu1 %vm630_vm1, %v601_v33  ;;  %v508_v58 = vpack.c.bf16 %v454_v54, %v453_v53  ;;  %v456_v62 = vld [vmem:[%s4113_s14 + $0x98] sm:$0xff]  ;;  %v554_v63 = vld [vmem:[%s4107_s30 + $0xa0] sm:$0xff]  ;;  %v555_v0 = vld [vmem:[%s4107_s30 + $0xa8] sm:$0xff]  ;;  %v606_v3 = vpack.c.bf16 %v553_v60, %v552_v59 }
  0x24   : > { %3687 = vmatprep.mubr.msk.bf16.mxu0 %vm1025_vm2, %v504_v34  ;;  %v457_v1 = vld [vmem:[%s4113_s14 + $0xa0] sm:$0xff]  ;;  %v458_v2 = vld [vmem:[%s4113_s14 + $0xa8] sm:$0xff]  ;;  %v509_v4 = vpack.c.bf16 %v456_v62, %v455_v61  ;;  %v607_v5 = vpack.c.bf16 %v555_v0, %v554_v63  ;;  %v556_v7 = vld [vmem:[%s4107_s30 + $0xb0] sm:$0xff] }
  0x25   : > { %v510_v6 = vpack.c.bf16 %v458_v2, %v457_v1  ;;  %v557_v8 = vld [vmem:[%s4107_s30 + $0xb8] sm:$0xff]  ;;  %v459_v9 = vld [vmem:[%s4113_s14 + $0xb0] sm:$0xff]  ;;  %v558_v11 = vld [vmem:[%s4107_s30 + $0xc0] sm:$0xff] }
  0x26   : > { %v460_v10 = vld [vmem:[%s4113_s14 + $0xb8] sm:$0xff]  ;;  %v559_v12 = vld [vmem:[%s4107_s30 + $0xc8] sm:$0xff]  ;;  %v461_v13 = vld [vmem:[%s4113_s14 + $0xc0] sm:$0xff]  ;;  %v608_v15 = vpack.c.bf16 %v557_v8, %v556_v7 }
  0x27   : > { %v462_v14 = vld [vmem:[%s4113_s14 + $0xc8] sm:$0xff]  ;;  %v511_v16 = vpack.c.bf16 %v460_v10, %v459_v9  ;;  %v609_v17 = vpack.c.bf16 %v559_v12, %v558_v11  ;;  %v560_v19 = vld [vmem:[%s4107_s30 + $0xd0] sm:$0xff]  ;;  %v561_v20 = vld [vmem:[%s4107_s30 + $0xd8] sm:$0xff] }
  0x28   : > { %v512_v18 = vpack.c.bf16 %v462_v14, %v461_v13  ;;  %v463_v21 = vld [vmem:[%s4113_s14 + $0xd0] sm:$0xff]  ;;  %v464_v22 = vld [vmem:[%s4113_s14 + $0xd8] sm:$0xff]  ;;  %v562_v23 = vld [vmem:[%s4107_s30 + $0xe0] sm:$0xff]  ;;  %v610_v27 = vpack.c.bf16 %v561_v20, %v560_v19 }
  0x29   : > { %v563_v24 = vld [vmem:[%s4107_s30 + $0xe8] sm:$0xff]  ;;  %v465_v25 = vld [vmem:[%s4113_s14 + $0xe0] sm:$0xff]  ;;  %v513_v28 = vpack.c.bf16 %v464_v22, %v463_v21  ;;  %v564_v31 = vld [vmem:[%s4107_s30 + $0xf0] sm:$0xff] }
  0x2a   : > { %3622 = vmatmul.mubr.msk.bf16.gmra.mrb[8].mxu1 %vm630_vm1, %v602_v43  ;;  %v466_v26 = vld [vmem:[%s4113_s14 + $0xe8] sm:$0xff]  ;;  %v611_v29 = vpack.c.bf16 %v563_v24, %v562_v23  ;;  %v565_v32 = vld [vmem:[%s4107_s30 + $0xf8] sm:$0xff]  ;;  %v467_v33 = vld [vmem:[%s4113_s14 + $0xf0] sm:$0xff] }
  0x2b   : > { %3688 = vmatmul.mubr.msk.bf16.gmra.mrb[8].mxu0 %vm1025_vm2, %v505_v44  ;;  %3625 = vmatprep.mubr.msk.bf16.mxu1 %vm630_vm1, %v603_v45  ;;  %v514_v30 = vpack.c.bf16 %v466_v26, %v465_v25  ;;  %v468_v34 = vld [vmem:[%s4113_s14 + $0xf8] sm:$0xff]  ;;  %v566_v35 = vld [vmem:[%s4107_s30 + $0x100] sm:$0xff]  ;;  %v567_v36 = vld [vmem:[%s4107_s30 + $0x108] sm:$0xff]  ;;  %v612_v39 = vpack.c.bf16 %v565_v32, %v564_v31 }
  0x2c   : > { %3691 = vmatprep.mubr.msk.bf16.mxu0 %vm1025_vm2, %v506_v46  ;;  %v469_v37 = vld [vmem:[%s4113_s14 + $0x100] sm:$0xff]  ;;  %v470_v38 = vld [vmem:[%s4113_s14 + $0x108] sm:$0xff]  ;;  %v515_v40 = vpack.c.bf16 %v468_v34, %v467_v33  ;;  %v613_v41 = vpack.c.bf16 %v567_v36, %v566_v35  ;;  %v568_v43 = vld [vmem:[%s4107_s30 + $0x110] sm:$0xff] }
  0x2d   : > { %v516_v42 = vpack.c.bf16 %v470_v38, %v469_v37  ;;  %v569_v44 = vld [vmem:[%s4107_s30 + $0x118] sm:$0xff]  ;;  %v471_v45 = vld [vmem:[%s4113_s14 + $0x110] sm:$0xff]  ;;  %v570_v47 = vld [vmem:[%s4107_s30 + $0x120] sm:$0xff] }
  0x2e   : > { %v472_v46 = vld [vmem:[%s4113_s14 + $0x118] sm:$0xff]  ;;  %v571_v48 = vld [vmem:[%s4107_s30 + $0x128] sm:$0xff]  ;;  %v473_v49 = vld [vmem:[%s4113_s14 + $0x120] sm:$0xff]  ;;  %v614_v51 = vpack.c.bf16 %v569_v44, %v568_v43 }
  0x2f   : > { %v474_v50 = vld [vmem:[%s4113_s14 + $0x128] sm:$0xff]  ;;  %v517_v52 = vpack.c.bf16 %v472_v46, %v471_v45  ;;  %v615_v53 = vpack.c.bf16 %v571_v48, %v570_v47  ;;  %v574_v59 = vld [vmem:[%s4107_s30 + $0x140] sm:$0xff]  ;;  %v492_v43 = vld [vmem:[%s4113_s14 + $0x1b8] sm:$0xff] }
  0x30   : > { %v518_v54 = vpack.c.bf16 %v474_v50, %v473_v49  ;;  %v575_v60 = vld [vmem:[%s4107_s30 + $0x148] sm:$0xff]  ;;  %v477_v61 = vld [vmem:[%s4113_s14 + $0x140] sm:$0xff] }
  0x31   : > { %v478_v62 = vld [vmem:[%s4113_s14 + $0x148] sm:$0xff]  ;;  %v617_v1 = vpack.c.bf16 %v575_v60, %v574_v59  ;;  %v578_v7 = vld [vmem:[%s4107_s30 + $0x160] sm:$0xff] }
  0x32   : > { %3626 = vmatmul.mubr.msk.bf16.gmra.mrb[12].mxu1 %vm630_vm1, %v604_v55  ;;  %v572_v55 = vld [vmem:[%s4107_s30 + $0x130] sm:$0xff]  ;;  %v520_v2 = vpack.c.bf16 %v478_v62, %v477_v61  ;;  %v579_v8 = vld [vmem:[%s4107_s30 + $0x168] sm:$0xff]  ;;  %v481_v9 = vld [vmem:[%s4113_s14 + $0x160] sm:$0xff] }
  0x33   : > { %3692 = vmatmul.mubr.msk.bf16.gmra.mrb[12].mxu0 %vm1025_vm2, %v507_v56  ;;  %3629 = vmatprep.mubr.msk.bf16.mxu1 %vm630_vm1, %v605_v57  ;;  %v573_v56 = vld [vmem:[%s4107_s30 + $0x138] sm:$0xff]  ;;  %v475_v57 = vld [vmem:[%s4113_s14 + $0x130] sm:$0xff]  ;;  %v482_v10 = vld [vmem:[%s4113_s14 + $0x168] sm:$0xff]  ;;  %v619_v13 = vpack.c.bf16 %v579_v8, %v578_v7 }
  0x34   : > { %3695 = vmatprep.mubr.msk.bf16.mxu0 %vm1025_vm2, %v508_v58  ;;  %v476_v58 = vld [vmem:[%s4113_s14 + $0x138] sm:$0xff]  ;;  %v616_v63 = vpack.c.bf16 %v573_v56, %v572_v55  ;;  %v522_v14 = vpack.c.bf16 %v482_v10, %v481_v9  ;;  %v582_v19 = vld [vmem:[%s4107_s30 + $0x180] sm:$0xff]  ;;  %v583_v20 = vld [vmem:[%s4107_s30 + $0x188] sm:$0xff] }
  0x35   : > { %v519_v0 = vpack.c.bf16 %v476_v58, %v475_v57  ;;  %v485_v21 = vld [vmem:[%s4113_s14 + $0x180] sm:$0xff]  ;;  %v486_v22 = vld [vmem:[%s4113_s14 + $0x188] sm:$0xff]  ;;  %v621_v25 = vpack.c.bf16 %v583_v20, %v582_v19  ;;  %v496_v55 = vld [vmem:[%s4113_s14 + $0x1d8] sm:$0xff] }
  0x36   : > { %v524_v26 = vpack.c.bf16 %v486_v22, %v485_v21  ;;  %v586_v31 = vld [vmem:[%s4107_s30 + $0x1a0] sm:$0xff]  ;;  %v587_v32 = vld [vmem:[%s4107_s30 + $0x1a8] sm:$0xff]  ;;  %v1412_v8 = vld [vmem:[%s4305_s20 + $0x10] sm:$0xff] }
  0x37   : > { %v489_v33 = vld [vmem:[%s4113_s14 + $0x1a0] sm:$0xff]  ;;  %v490_v34 = vld [vmem:[%s4113_s14 + $0x1a8] sm:$0xff]  ;;  %v623_v37 = vpack.c.bf16 %v587_v32, %v586_v31  ;;  %v1413_v9 = vld [vmem:[%s4305_s20 + $0x18] sm:$0xff] }
  0x38   : > { %v526_v38 = vpack.c.bf16 %v490_v34, %v489_v33  ;;  %v590_v44 = vld [vmem:[%s4107_s30 + $0x1c0] sm:$0xff]  ;;  %v591_v45 = vld [vmem:[%s4107_s30 + $0x1c8] sm:$0xff]  ;;  %v1420_v20 = vld [vmem:[%s4305_s20 + $0x50] sm:$0xff] }
  0x39   : > { %v493_v46 = vld [vmem:[%s4113_s14 + $0x1c0] sm:$0xff]  ;;  %v494_v47 = vld [vmem:[%s4113_s14 + $0x1c8] sm:$0xff]  ;;  %v625_v50 = vpack.c.bf16 %v591_v45, %v590_v44  ;;  %v1421_v21 = vld [vmem:[%s4305_s20 + $0x58] sm:$0xff] }
  0x3a   : > { %3630 = vmatmul.mubr.msk.bf16.gmra.mrb[16].mxu1 %vm630_vm1, %v606_v3  ;;  %v576_v3 = vld [vmem:[%s4107_s30 + $0x150] sm:$0xff]  ;;  %v594_v56 = vld [vmem:[%s4107_s30 + $0x1e0] sm:$0xff]  ;;  %v595_v57 = vld [vmem:[%s4107_s30 + $0x1e8] sm:$0xff] }
  0x3b   : > { %3696 = vmatmul.mubr.msk.bf16.gmra.mrb[16].mxu0 %vm1025_vm2, %v509_v4  ;;  %3633 = vmatprep.mubr.msk.bf16.mxu1 %vm630_vm1, %v607_v5  ;;  %v577_v4 = vld [vmem:[%s4107_s30 + $0x158] sm:$0xff]  ;;  %v479_v5 = vld [vmem:[%s4113_s14 + $0x150] sm:$0xff]  ;;  %v497_v58 = vld [vmem:[%s4113_s14 + $0x1e0] sm:$0xff]  ;;  %v627_v62 = vpack.c.bf16 %v595_v57, %v594_v56 }
  0x3c   : > { %3699 = vmatprep.mubr.msk.bf16.mxu0 %vm1025_vm2, %v510_v6  ;;  %v480_v6 = vld [vmem:[%s4113_s14 + $0x158] sm:$0xff]  ;;  %v618_v11 = vpack.c.bf16 %v577_v4, %v576_v3  ;;  %v498_v59 = vld [vmem:[%s4113_s14 + $0x1e8] sm:$0xff]  ;;  %v1414_v10 = vld [vmem:[%s4305_s20 + $0x20] sm:$0xff] }
  0x3d   : > { %v521_v12 = vpack.c.bf16 %v480_v6, %v479_v5  ;;  %v1411_v3 = vld [vmem:[%s4305_s20 + $0x8] sm:$0xff]  ;;  %v1422_v22 = vld [vmem:[%s4305_s20 + $0x60] sm:$0xff]  ;;  %v1428_v32 = vld [vmem:[%s4305_s20 + $0x90] sm:$0xff] }
  0x3e   : > { %v4011_v7 = vld [vmem:[%s5110_s7 + $0x8] sm:$0xff]   ;;  %v1429_v33 = vld [vmem:[%s4305_s20 + $0x98] sm:$0xff]  ;;  %v1430_v34 = vld [vmem:[%s4305_s20 + $0xa0] sm:$0xff] }
  0x3f   : > { %v1436_v45 = vld [vmem:[%s4305_s20 + $0xd0] sm:$0xff] }
  0x40   : > { %v1444_v57 = vld [vmem:[%s4305_s20 + $0x110] sm:$0xff] }
  0x42   : > { %3634 = vmatmul.mubr.msk.bf16.gmra.mrb[20].mxu1 %vm630_vm1, %v608_v15  ;;  %v580_v15 = vld [vmem:[%s4107_s30 + $0x170] sm:$0xff] }
  0x43   : > { %3700 = vmatmul.mubr.msk.bf16.gmra.mrb[20].mxu0 %vm1025_vm2, %v511_v16  ;;  %3637 = vmatprep.mubr.msk.bf16.mxu1 %vm630_vm1, %v609_v17  ;;  %v581_v16 = vld [vmem:[%s4107_s30 + $0x178] sm:$0xff]  ;;  %v483_v17 = vld [vmem:[%s4113_s14 + $0x170] sm:$0xff] }
  0x44   : > { %3703 = vmatprep.mubr.msk.bf16.mxu0 %vm1025_vm2, %v512_v18  ;;  %v484_v18 = vld [vmem:[%s4113_s14 + $0x178] sm:$0xff]  ;;  %v620_v23 = vpack.c.bf16 %v581_v16, %v580_v15  ;;  %v1418_v16 = vld [vmem:[%s4305_s20 + $0x40] sm:$0xff] }
  0x45   : > { %v523_v24 = vpack.c.bf16 %v484_v18, %v483_v17  ;;  %v1417_v15 = vld [vmem:[%s4305_s20 + $0x38] sm:$0xff]  ;;  %v1419_v17 = vld [vmem:[%s4305_s20 + $0x48] sm:$0xff] }
  0x46   : > { %v1477_v19 = vpack.c.bf16 %v1419_v17, %v1418_v16 }
  0x4a   : > { %3638 = vmatmul.mubr.msk.bf16.gmra.mrb[24].mxu1 %vm630_vm1, %v610_v27  ;;  %v584_v27 = vld [vmem:[%s4107_s30 + $0x190] sm:$0xff] }
  0x4b   : > { %3704 = vmatmul.mubr.msk.bf16.gmra.mrb[24].mxu0 %vm1025_vm2, %v513_v28  ;;  %3641 = vmatprep.mubr.msk.bf16.mxu1 %vm630_vm1, %v611_v29  ;;  %v585_v28 = vld [vmem:[%s4107_s30 + $0x198] sm:$0xff]  ;;  %v487_v29 = vld [vmem:[%s4113_s14 + $0x190] sm:$0xff] }
  0x4c   : > { %3707 = vmatprep.mubr.msk.bf16.mxu0 %vm1025_vm2, %v514_v30  ;;  %v488_v30 = vld [vmem:[%s4113_s14 + $0x198] sm:$0xff]  ;;  %v622_v35 = vpack.c.bf16 %v585_v28, %v584_v27  ;;  %v1426_v28 = vld [vmem:[%s4305_s20 + $0x80] sm:$0xff] }
  0x4d   : > { %v525_v36 = vpack.c.bf16 %v488_v30, %v487_v29  ;;  %v1425_v27 = vld [vmem:[%s4305_s20 + $0x78] sm:$0xff]  ;;  %v1427_v29 = vld [vmem:[%s4305_s20 + $0x88] sm:$0xff] }
  0x4e   : > { %v1481_v31 = vpack.c.bf16 %v1427_v29, %v1426_v28 }
  0x52   : > { %3642 = vmatmul.mubr.msk.bf16.gmra.mrb[28].mxu1 %vm630_vm1, %v612_v39  ;;  %v588_v39 = vld [vmem:[%s4107_s30 + $0x1b0] sm:$0xff] }
  0x53   : > { %3708 = vmatmul.mubr.msk.bf16.gmra.mrb[28].mxu0 %vm1025_vm2, %v515_v40  ;;  %3645 = vmatprep.mubr.msk.bf16.mxu1 %vm630_vm1, %v613_v41  ;;  %v589_v40 = vld [vmem:[%s4107_s30 + $0x1b8] sm:$0xff]  ;;  %v491_v41 = vld [vmem:[%s4113_s14 + $0x1b0] sm:$0xff] }
  0x54   : > { %3711 = vmatprep.mubr.msk.bf16.mxu0 %vm1025_vm2, %v516_v42  ;;  %v4010_v42 = vld [vmem:[%s5110_s7] sm:$0xff]   ;;  %v624_v48 = vpack.c.bf16 %v589_v40, %v588_v39  ;;  %v527_v49 = vpack.c.bf16 %v492_v43, %v491_v41  ;;  %v1432_v39 = vld [vmem:[%s4305_s20 + $0xb0] sm:$0xff]  ;;  %v1433_v40 = vld [vmem:[%s4305_s20 + $0xb8] sm:$0xff] }
  0x55   : > { %3809 = vmatprep.subr.bf16.mxu1 %v4010_v42  ;;  %v1434_v41 = vld [vmem:[%s4305_s20 + $0xc0] sm:$0xff]  ;;  %v1484_v43 = vpack.c.bf16 %v1433_v40, %v1432_v39 }
  0x56   : > { %3810 = vmatpush3.bf16.msra.mxu1 %v4010_v42  ;;  %v1435_v42 = vld [vmem:[%s4305_s20 + $0xc8] sm:$0xff] }
  0x57   : > { %3811 = vmatprep.subr.bf16.mxu1 %v4011_v7  ;;  %v1485_v44 = vpack.c.bf16 %v1435_v42, %v1434_v41  ;;  %v1468_v41 = vld [vmem:[%s4305_s20 + $0x1d0] sm:$0xff]  ;;  %v1469_v42 = vld [vmem:[%s4305_s20 + $0x1d8] sm:$0xff] }
  0x5a   : > { %3646 = vmatmul.mubr.msk.bf16.gmra.mrb[32].mxu1 %vm630_vm1, %v614_v51  ;;  %v528_v51 = vpack.c.bf16 %v494_v47, %v493_v46  ;;  %v1437_v46 = vld [vmem:[%s4305_s20 + $0xd8] sm:$0xff]  ;;  %v1438_v47 = vld [vmem:[%s4305_s20 + $0xe0] sm:$0xff] }
  0x5b   : > { %3712 = vmatmul.mubr.msk.bf16.gmra.mrb[32].mxu0 %vm1025_vm2, %v517_v52  ;;  %3649 = vmatprep.mubr.msk.bf16.mxu1 %vm630_vm1, %v615_v53  ;;  %v592_v52 = vld [vmem:[%s4107_s30 + $0x1d0] sm:$0xff]  ;;  %v593_v53 = vld [vmem:[%s4107_s30 + $0x1d8] sm:$0xff] }
  0x5c   : > { %3715 = vmatprep.mubr.msk.bf16.mxu0 %vm1025_vm2, %v518_v54  ;;  %v495_v54 = vld [vmem:[%s4113_s14 + $0x1d0] sm:$0xff]  ;;  %v626_v60 = vpack.c.bf16 %v593_v53, %v592_v52  ;;  %3812 = vmatpush3.bf16.msra.mxu1 %v4011_v7  ;;  %v1441_v52 = vld [vmem:[%s4305_s20 + $0xf8] sm:$0xff]  ;;  %v1442_v53 = vld [vmem:[%s4305_s20 + $0x100] sm:$0xff] }
  0x5d   : > { %v529_v61 = vpack.c.bf16 %v496_v55, %v495_v54  ;;  %v1443_v54 = vld [vmem:[%s4305_s20 + $0x108] sm:$0xff]  ;;  %v1454_v7 = vld [vmem:[%s4305_s20 + $0x160] sm:$0xff] }
  0x5e   : > { %v1489_v56 = vpack.c.bf16 %v1443_v54, %v1442_v53 }
  0x62   : > { %3650 = vmatmul.mubr.msk.bf16.gmra.mrb[36].mxu1 %vm630_vm1, %v616_v63  ;;  %v530_v63 = vpack.c.bf16 %v498_v59, %v497_v58  ;;  %v1445_v58 = vld [vmem:[%s4305_s20 + $0x118] sm:$0xff]  ;;  %v1446_v59 = vld [vmem:[%s4305_s20 + $0x120] sm:$0xff] }
  0x63   : > { %3716 = vmatmul.mubr.msk.bf16.gmra.mrb[36].mxu0 %vm1025_vm2, %v519_v0  ;;  %3653 = vmatprep.mubr.msk.bf16.mxu1 %vm630_vm1, %v617_v1  ;;  %v596_v0 = vld [vmem:[%s4107_s30 + $0x1f0] sm:$0xff] }
  0x64   : > { %3719 = vmatprep.mubr.msk.bf16.mxu0 %vm1025_vm2, %v520_v2  ;;  %v499_v1 = vld [vmem:[%s4113_s14 + $0x1f0] sm:$0xff]  ;;  %v1410_v2 = vld [vmem:[%s4305_s20] sm:$0xff]  ;;  %v628_v4 = vpack.c.bf16 %v596_v0, %v596_v0  ;;  %v1449_v0 = vld [vmem:[%s4305_s20 + $0x138] sm:$0xff]  ;;  %s4909_s14 = scalar_lea.vmem %s5114_s11, %s4101_s27 }
  0x65   : > { %v531_v5 = vpack.c.bf16 %v499_v1, %v499_v1  ;;  %v1473_v6 = vpack.c.bf16 %v1411_v3, %v1410_v2  ;;  %v1450_v1 = vld [vmem:[%s4305_s20 + $0x140] sm:$0xff]  ;;  %v1451_v2 = vld [vmem:[%s4305_s20 + $0x148] sm:$0xff] }
  0x6a   : > { %3654 = vmatmul.mubr.msk.bf16.gmra.mrb[40].mxu1 %vm630_vm1, %v618_v11  ;;  %v1415_v11 = vld [vmem:[%s4305_s20 + $0x28] sm:$0xff] }
  0x6b   : > { %3720 = vmatmul.mubr.msk.bf16.gmra.mrb[40].mxu0 %vm1025_vm2, %v521_v12  ;;  %3657 = vmatprep.mubr.msk.bf16.mxu1 %vm630_vm1, %v619_v13  ;;  %v1474_v12 = vpack.c.bf16 %v1413_v9, %v1412_v8  ;;  %v1475_v13 = vpack.c.bf16 %v1415_v11, %v1414_v10  ;;  %v1455_v8 = vld [vmem:[%s4305_s20 + $0x168] sm:$0xff]  ;;  %v1456_v11 = vld [vmem:[%s4305_s20 + $0x170] sm:$0xff] }
  0x6c   : > { %3723 = vmatprep.mubr.msk.bf16.mxu0 %vm1025_vm2, %v522_v14  ;;  %v1416_v14 = vld [vmem:[%s4305_s20 + $0x30] sm:$0xff]  ;;  %v1495_v10 = vpack.c.bf16 %v1455_v8, %v1454_v7 }
  0x6d   : > { %v1476_v18 = vpack.c.bf16 %v1417_v15, %v1416_v14  ;;  %v1459_v14 = vld [vmem:[%s4305_s20 + $0x188] sm:$0xff] }
  0x72   : > { %3658 = vmatmul.mubr.msk.bf16.gmra.mrb[44].mxu1 %vm630_vm1, %v620_v23  ;;  %v1423_v23 = vld [vmem:[%s4305_s20 + $0x68] sm:$0xff] }
  0x73   : > { %3724 = vmatmul.mubr.msk.bf16.gmra.mrb[44].mxu0 %vm1025_vm2, %v523_v24  ;;  %3661 = vmatprep.mubr.msk.bf16.mxu1 %vm630_vm1, %v621_v25  ;;  %v1478_v24 = vpack.c.bf16 %v1421_v21, %v1420_v20  ;;  %v1479_v25 = vpack.c.bf16 %v1423_v23, %v1422_v22  ;;  %v1460_v21 = vld [vmem:[%s4305_s20 + $0x190] sm:$0xff]  ;;  %v1461_v22 = vld [vmem:[%s4305_s20 + $0x198] sm:$0xff]  ;;  %v1462_v23 = vld [vmem:[%s4305_s20 + $0x1a0] sm:$0xff] }
  0x74   : > { %3727 = vmatprep.mubr.msk.bf16.mxu0 %vm1025_vm2, %v524_v26  ;;  %v1424_v26 = vld [vmem:[%s4305_s20 + $0x70] sm:$0xff] }
  0x75   : > { %v1480_v30 = vpack.c.bf16 %v1425_v27, %v1424_v26  ;;  %v1498_v27 = vpack.c.bf16 %v1461_v22, %v1460_v21 }
  0x7a   : > { %3662 = vmatmul.mubr.msk.bf16.gmra.mrb[48].mxu1 %vm630_vm1, %v622_v35  ;;  %v1431_v35 = vld [vmem:[%s4305_s20 + $0xa8] sm:$0xff] }
  0x7b   : > { %3728 = vmatmul.mubr.msk.bf16.gmra.mrb[48].mxu0 %vm1025_vm2, %v525_v36  ;;  %3665 = vmatprep.mubr.msk.bf16.mxu1 %vm630_vm1, %v623_v37  ;;  %v1482_v36 = vpack.c.bf16 %v1429_v33, %v1428_v32  ;;  %v1483_v37 = vpack.c.bf16 %v1431_v35, %v1430_v34  ;;  %v1465_v32 = vld [vmem:[%s4305_s20 + $0x1b8] sm:$0xff]  ;;  %v1466_v33 = vld [vmem:[%s4305_s20 + $0x1c0] sm:$0xff]  ;;  %v1467_v34 = vld [vmem:[%s4305_s20 + $0x1c8] sm:$0xff] }
  0x7c   : > { %3731 = vmatprep.mubr.msk.bf16.mxu0 %vm1025_vm2, %v526_v38  ;;  %v4012_v38 = vld [vmem:[%s5110_s7 + $0x10] sm:$0xff]   ;;  %v1501_v39 = vpack.c.bf16 %v1467_v34, %v1466_v33 }
  0x7d   : > { %3813 = vmatprep.subr.bf16.mxu1 %v4012_v38 }
  0x7e   : > { %3814 = vmatpush3.bf16.msra.mxu1 %v4012_v38 }
  0x82   : > { %3666 = vmatmul.mubr.msk.bf16.gmra.mrb[52].mxu1 %vm630_vm1, %v624_v48  ;;  %v1439_v48 = vld [vmem:[%s4305_s20 + $0xe8] sm:$0xff] }
  0x83   : > { %3732 = vmatmul.mubr.msk.bf16.gmra.mrb[52].mxu0 %vm1025_vm2, %v527_v49  ;;  %3669 = vmatprep.mubr.msk.bf16.mxu1 %vm630_vm1, %v625_v50  ;;  %v1486_v49 = vpack.c.bf16 %v1437_v46, %v1436_v45  ;;  %v1487_v50 = vpack.c.bf16 %v1439_v48, %v1438_v47  ;;  %v1502_v47 = vpack.c.bf16 %v1469_v42, %v1468_v41 }
  0x84   : > { %3735 = vmatprep.mubr.msk.bf16.mxu0 %vm1025_vm2, %v528_v51  ;;  %v1440_v51 = vld [vmem:[%s4305_s20 + $0xf0] sm:$0xff] }
  0x85   : > { %v1488_v55 = vpack.c.bf16 %v1441_v52, %v1440_v51  ;;  %v1472_v51 = vld [vmem:[%s4305_s20 + $0x1f0] sm:$0xff] }
  0x86   : > { %v1504_v54 = vpack.c.bf16 %v1472_v51, %v1472_v51 }
  0x8a   : > { %3670 = vmatmul.mubr.msk.bf16.gmra.mrb[56].mxu1 %vm630_vm1, %v626_v60  ;;  %v1447_v60 = vld [vmem:[%s4305_s20 + $0x128] sm:$0xff] }
  0x8b   : > { %3736 = vmatmul.mubr.msk.bf16.gmra.mrb[56].mxu0 %vm1025_vm2, %v529_v61  ;;  %3673 = vmatprep.mubr.msk.bf16.mxu1 %vm630_vm1, %v627_v62  ;;  %v1490_v61 = vpack.c.bf16 %v1445_v58, %v1444_v57  ;;  %v1491_v62 = vpack.c.bf16 %v1447_v60, %v1446_v59 }
  0x8c   : > { %3739 = vmatprep.mubr.msk.bf16.mxu0 %vm1025_vm2, %v530_v63  ;;  %v1448_v63 = vld [vmem:[%s4305_s20 + $0x130] sm:$0xff] }
  0x8d   : > { %v1492_v3 = vpack.c.bf16 %v1449_v0, %v1448_v63 }
  0x92   : > { %3674 = vmatmul.mubr.msk.bf16.gmra.mrb[60].mxu1 %vm630_vm1, %v628_v4  ;;  %v1493_v4 = vpack.c.bf16 %v1451_v2, %v1450_v1 }
  0x93   : > { %3740 = vmatmul.mubr.msk.bf16.gmra.mrb[60].mxu0 %vm1025_vm2, %v531_v5  ;;  %v1452_v5 = vld [vmem:[%s4305_s20 + $0x150] sm:$0xff] }
  0x94   : > { %3745 = vmatprep.mubr.msk.bf16.mxu0 %vm1025_vm2, %v1473_v6  ;;  %v1453_v6 = vld [vmem:[%s4305_s20 + $0x158] sm:$0xff] }
  0x95   : > { %v1494_v9 = vpack.c.bf16 %v1453_v6, %v1452_v5 }
  0x9b   : > { %3746 = vmatmul.mubr.msk.bf16.vlgmr.msra.gmra.mrb[0].mxu0 %vm1025_vm2, %v1474_v12  ;;  %v1457_v12 = vld [vmem:[%s4305_s20 + $0x178] sm:$0xff] }
  0x9c   : > { %3749 = vmatprep.mubr.msk.bf16.mxu0 %vm1025_vm2, %v1475_v13  ;;  %v1458_v13 = vld [vmem:[%s4305_s20 + $0x180] sm:$0xff]  ;;  %v1496_v17 = vpack.c.bf16 %v1457_v12, %v1456_v11 }
  0xa3   : > { %3750 = vmatmul.mubr.msk.bf16.gmra.mrb[4].mxu0 %vm1025_vm2, %v1476_v18 }
  0xa4   : > { %3753 = vmatprep.mubr.msk.bf16.mxu0 %vm1025_vm2, %v1477_v19  ;;  %v1497_v19 = vpack.c.bf16 %v1459_v14, %v1458_v13 }
  0xab   : > { %3754 = vmatmul.mubr.msk.bf16.gmra.mrb[8].mxu0 %vm1025_vm2, %v1478_v24  ;;  %v1463_v24 = vld [vmem:[%s4305_s20 + $0x1a8] sm:$0xff] }
  0xac   : > { %3757 = vmatprep.mubr.msk.bf16.mxu0 %vm1025_vm2, %v1479_v25  ;;  %v1499_v29 = vpack.c.bf16 %v1463_v24, %v1462_v23 }
  0xb3   : > { %3758 = vmatmul.mubr.msk.bf16.gmra.mrb[12].mxu0 %vm1025_vm2, %v1480_v30 }
  0xb4   : > { %3761 = vmatprep.mubr.msk.bf16.mxu0 %vm1025_vm2, %v1481_v31  ;;  %v1464_v31 = vld [vmem:[%s4305_s20 + $0x1b0] sm:$0xff] }
  0xbb   : > { %3762 = vmatmul.mubr.msk.bf16.gmra.mrb[16].mxu0 %vm1025_vm2, %v1482_v36 }
  0xbc   : > { %3765 = vmatprep.mubr.msk.bf16.mxu0 %vm1025_vm2, %v1483_v37  ;;  %v1500_v37 = vpack.c.bf16 %v1465_v32, %v1464_v31 }
  0xc3   : > { %3766 = vmatmul.mubr.msk.bf16.gmra.mrb[20].mxu0 %vm1025_vm2, %v1484_v43  ;;  %v1470_v43 = vld [vmem:[%s4305_s20 + $0x1e0] sm:$0xff] }
  0xc4   : > { %3769 = vmatprep.mubr.msk.bf16.mxu0 %vm1025_vm2, %v1485_v44  ;;  %v1471_v44 = vld [vmem:[%s4305_s20 + $0x1e8] sm:$0xff] }
  0xcb   : > { %3770 = vmatmul.mubr.msk.bf16.gmra.mrb[24].mxu0 %vm1025_vm2, %v1486_v49  ;;  %v1503_v49 = vpack.c.bf16 %v1471_v44, %v1470_v43 }
  0xcc   : > { %3773 = vmatprep.mubr.msk.bf16.mxu0 %vm1025_vm2, %v1487_v50 }
  0xd3   : > { %3774 = vmatmul.mubr.msk.bf16.gmra.mrb[28].mxu0 %vm1025_vm2, %v1488_v55 }
  0xd4   : > { %3777 = vmatprep.mubr.msk.bf16.mxu0 %vm1025_vm2, %v1489_v56 }
  0xdb   : > { %3778 = vmatmul.mubr.msk.bf16.gmra.mrb[32].mxu0 %vm1025_vm2, %v1490_v61 }
  0xdc   : > { %3781 = vmatprep.mubr.msk.bf16.mxu0 %vm1025_vm2, %v1491_v62 }
  0xe3   : > { %3782 = vmatmul.mubr.msk.bf16.gmra.mrb[36].mxu0 %vm1025_vm2, %v1492_v3 }
  0xe4   : > { %3785 = vmatprep.mubr.msk.bf16.mxu0 %vm1025_vm2, %v1493_v4 }
  0xeb   : > { %3786 = vmatmul.mubr.msk.bf16.gmra.mrb[40].mxu0 %vm1025_vm2, %v1494_v9 }
  0xec   : > { %3789 = vmatprep.mubr.msk.bf16.mxu0 %vm1025_vm2, %v1495_v10 }
  0xed   : > { %v4393_v15 = vpop.f32.mrb[0].mxu1 }
  0xee   : > { %v4395_v16 = vpop.f32.mrb[1].mxu1 }
  0xef   : > { %v4397_v18 = vpop.f32.mrb[2].mxu1 }
  0xf0   : > { %v4399_v20 = vpop.f32.mrb[3].mxu1 }
  0xf3   : > { %3790 = vmatmul.mubr.msk.bf16.gmra.mrb[44].mxu0 %vm1025_vm2, %v1496_v17 }
  0xf4   : > { %3793 = vmatprep.mubr.msk.bf16.mxu0 %vm1025_vm2, %v1497_v19 }
  0xf5   : > { %v4407_v25 = vpop.f32.mrb[4].mxu1 }
  0xf6   : > { %v4409_v26 = vpop.f32.mrb[5].mxu1 }
  0xf7   : > { %v4411_v28 = vpop.f32.mrb[6].mxu1 }
  0xf8   : > { %v4413_v30 = vpop.f32.mrb[7].mxu1 }
  0xfb   : > { %3794 = vmatmul.mubr.msk.bf16.gmra.mrb[48].mxu0 %vm1025_vm2, %v1498_v27 }
  0xfc   : > { %3797 = vmatprep.mubr.msk.bf16.mxu0 %vm1025_vm2, %v1499_v29 }
  0xfd   : > { %v4421_v35 = vpop.f32.mrb[8].mxu1 }
  0xfe   : > { %v4423_v36 = vpop.f32.mrb[9].mxu1 }
  0xff   : > { %v4425_v38 = vpop.f32.mrb[10].mxu1 }
 0x100   : > { %v4427_v40 = vpop.f32.mrb[11].mxu1 }
 0x103   : > { %3798 = vmatmul.mubr.msk.bf16.gmra.mrb[52].mxu0 %vm1025_vm2, %v1500_v37 }
 0x104   : > { %3801 = vmatprep.mubr.msk.bf16.mxu0 %vm1025_vm2, %v1501_v39 }
 0x105   : > { %v4435_v45 = vpop.f32.mrb[12].mxu1 }
 0x106   : > { %v4437_v46 = vpop.f32.mrb[13].mxu1 }
 0x107   : > { %v4439_v48 = vpop.f32.mrb[14].mxu1 }
 0x108   : > { %v4441_v50 = vpop.f32.mrb[15].mxu1 }
 0x10b   : > { %3802 = vmatmul.mubr.msk.bf16.gmra.mrb[56].mxu0 %vm1025_vm2, %v1502_v47 }
 0x10c   : > { %3805 = vmatprep.mubr.msk.bf16.mxu0 %vm1025_vm2, %v1503_v49 }
 0x10d   : > { %v4446_v52 = vpop.f32.mrb[16].mxu1 }
 0x10e   : > { %v4448_v53 = vpop.f32.mrb[17].mxu1 }
 0x10f   : > { %v4450_v55 = vpop.f32.mrb[18].mxu1 }
 0x110   : > { %v4452_v56 = vpop.f32.mrb[19].mxu1 }
 0x113   : > { %3806 = vmatmul.mubr.msk.bf16.gmra.mrb[64].mxu0 %vm1025_vm2, %v1504_v54 }
 0x115   : > { %v4455_v57 = vpop.f32.mrb[20].mxu1 }
 0x116   : > { %v4457_v58 = vpop.f32.mrb[21].mxu1 }
 0x117   : > { %v4459_v59 = vpop.f32.mrb[22].mxu1 }
 0x118   : > { %v4461_v60 = vpop.f32.mrb[23].mxu1 }
 0x11d   : > { %v4463_v61 = vpop.f32.mrb[24].mxu1 }
 0x11e   : > { %v4465_v62 = vpop.f32.mrb[25].mxu1 }
 0x11f   : > { %v4467_v63 = vpop.f32.mrb[26].mxu1 }
 0x120   : > { %v4469_v0 = vpop.f32.mrb[27].mxu1 }
 0x125   : > { %v4471_v1 = vpop.f32.mrb[28].mxu1 }
 0x126   : > { %v4473_v2 = vpop.f32.mrb[29].mxu1 }
 0x127   : > { %v4475_v3 = vpop.f32.mrb[30].mxu1 }
 0x128   : > { %v4477_v4 = vpop.f32.mrb[31].mxu1 }
 0x12d   : > { %v4479_v5 = vpop.f32.mrb[32].mxu1 }
 0x12e   : > { %v4481_v6 = vpop.f32.mrb[33].mxu1 }
 0x12f   : > { %v4483_v7 = vpop.f32.mrb[34].mxu1 }
 0x130   : > { %v4485_v8 = vpop.f32.mrb[35].mxu1 }
 0x135   : > { %v4487_v9 = vpop.f32.mrb[36].mxu1 }
 0x136   : > { %v4489_v10 = vpop.f32.mrb[37].mxu1 }
 0x137   : > { %v4491_v11 = vpop.f32.mrb[38].mxu1 }
 0x138   : > { %v4493_v12 = vpop.f32.mrb[39].mxu1 }
 0x13d   : > { %v4495_v13 = vpop.f32.mrb[40].mxu1 }
 0x13e   : > { %v4497_v14 = vpop.f32.mrb[41].mxu1 }
 0x13f   : > { %v4499_v17 = vpop.f32.mrb[42].mxu1 }
 0x140   : > { %v4501_v19 = vpop.f32.mrb[43].mxu1 }
 0x145   : > { %v4503_v21 = vpop.f32.mrb[44].mxu1 }
 0x146   : > { %5115 = vst [vmem:[#allocation3_spill] sm:$0xff] %v4503_v21  ;;  %v4505_v22 = vpop.f32.mrb[45].mxu1 }
 0x147   : > { %5116 = vst [vmem:[#allocation4_spill] sm:$0xff] %v4505_v22  ;;  %v4507_v23 = vpop.f32.mrb[46].mxu1 }
 0x148   : > { %5117 = vst [vmem:[#allocation5_spill] sm:$0xff] %v4507_v23  ;;  %v4509_v24 = vpop.f32.mrb[47].mxu1 }
 0x149   : > { %5118 = vst [vmem:[#allocation6_spill] sm:$0xff] %v4509_v24 }
 0x14d   : > { %v4511_v27 = vpop.f32.mrb[48].mxu1 }
 0x14e   : > { %5119 = vst [vmem:[#allocation7_spill] sm:$0xff] %v4511_v27  ;;  %v4513_v29 = vpop.f32.mrb[49].mxu1 }
 0x14f   : > { %5120 = vst [vmem:[#allocation8_spill] sm:$0xff] %v4513_v29  ;;  %v4515_v31 = vpop.f32.mrb[50].mxu1 }
 0x150   : > { %5121 = vst [vmem:[#allocation9_spill] sm:$0xff] %v4515_v31  ;;  %v4517_v32 = vpop.f32.mrb[51].mxu1 }
 0x151   : > { %5122 = vst [vmem:[#allocation10_spill] sm:$0xff] %v4517_v32 }
 0x155   : > { %v4519_v33 = vpop.f32.mrb[52].mxu1 }
 0x156   : > { %5123 = vst [vmem:[#allocation11_spill] sm:$0xff] %v4519_v33  ;;  %v4521_v34 = vpop.f32.mrb[53].mxu1 }
 0x157   : > { %5124 = vst [vmem:[#allocation12_spill] sm:$0xff] %v4521_v34  ;;  %v4523_v37 = vpop.f32.mrb[54].mxu1 }
 0x158   : > { %5125 = vst [vmem:[#allocation13_spill] sm:$0xff] %v4523_v37  ;;  %v4525_v39 = vpop.f32.mrb[55].mxu1 }
 0x159   : > { %5126 = vst [vmem:[#allocation14_spill] sm:$0xff] %v4525_v39 }
 0x15d   : > { %v4527_v41 = vpop.f32.mrb[56].mxu1 }
 0x15e   : > { %5127 = vst [vmem:[#allocation15_spill] sm:$0xff] %v4527_v41  ;;  %v4529_v42 = vpop.f32.mrb[57].mxu1 }
 0x15f   : > { %5128 = vst [vmem:[#allocation16_spill] sm:$0xff] %v4529_v42  ;;  %v4531_v43 = vpop.f32.mrb[58].mxu1 }
 0x160   : > { %5129 = vst [vmem:[#allocation17_spill] sm:$0xff] %v4531_v43  ;;  %v4533_v44 = vpop.f32.mrb[59].mxu1  ;;  %v4544_v43 = vld [vmem:[%s5109_s6] ss:$0 sm:$0xff] }
 0x161   : > { %5130 = vst [vmem:[#allocation18_spill] sm:$0xff] %v4533_v44 }
 0x165   : > { %v3675_v47 = vpop.f32.mrb[60].mxu1 }
 0x166   : > { %v3741_v49 = vpop.f32.mrb[60].mxu0  ;;  %v1005_v51 = vpop.f32.mrb[61].mxu1 }
 0x167   : > { %v4535_v54 = vadd.f32 %v3741_v49, %v3675_v47  ;;  %v1396_v33 = vpop.f32.mrb[61].mxu0  ;;  %v3676_v32 = vpop.f32.mrb[62].mxu1 }
 0x168   : > { %v4537_v34 = vadd.f32 %v1396_v33, %v1005_v51  ;;  %v3742_v37 = vpop.f32.mrb[62].mxu0  ;;  %v1008_v31 = vpop.f32.mrb[63].mxu1 }
 0x169   : > { %5131 = vst [vmem:[#allocation19_spill] sm:$0xff] %v4535_v54  ;;  %v1399_v39 = vpop.f32.mrb[63].mxu0 }
 0x16a   : > { %5132 = vst [vmem:[#allocation20_spill] sm:$0xff] %v4537_v34  ;;  %v4539_v29 = vadd.f32 %v1399_v39, %v1008_v31 }
 0x16c   : > { %5133 = vst [vmem:[#allocation21_spill] sm:$0xff] %v4539_v29 }
 0x16e   : > { %v3747_v41 = vpop.f32.mrb[0].mxu0 }
 0x16f   : > { %v3879_v44 = vadd.f32 %v3747_v41, %v4393_v15  ;;  %v1643_v42 = vpop.f32.mrb[1].mxu0 }
 0x170   : > { %v3880_v47 = vadd.f32 %v1643_v42, %v4395_v16  ;;  %v3748_v49 = vpop.f32.mrb[2].mxu0 }
 0x171   : > { %v1969_v32 = vadd.f32 %v3879_v44, %v4544_v43  ;;  %v3881_v33 = vadd.f32 %v3748_v49, %v4397_v18  ;;  %v1646_v37 = vpop.f32.mrb[3].mxu0 }
 0x172   : > { %v1967_v31 = vadd.f32 %v3880_v47, %v4544_v43  ;;  %v3882_v39 = vadd.f32 %v1646_v37, %v4399_v20 }
 0x173   : > { %v2095_v51 = vmul.f32 0.05, %v1969_v32  ;;  %v1970_v29 = vadd.f32 %v3881_v33, %v4544_v43  ;;  %vm2032_vm3 = vcmp.gt.f32.partialorder %v1969_v32, 0.0 }
 0x174   : > { %v2093_v34 = vmul.f32 0.05, %v1967_v31  ;;  %v1968_v15 = vadd.f32 %v3882_v39, %v4544_v43  ;;  %vm2030_vm4 = vcmp.gt.f32.partialorder %v1967_v31, 0.0 }
 0x175   : > { %vm2033_vm5 = vcmp.gt.f32.partialorder %v1970_v29, 0.0  ;;  %v2096_v16 = vmul.f32 0.05, %v1970_v29  ;;  %v2158_v44 = vsel %vm2032_vm3, %v1969_v32, %v2095_v51 }
 0x176   : > { %vm2031_vm6 = vcmp.gt.f32.partialorder %v1968_v15, 0.0  ;;  %v2094_v41 = vmul.f32 0.05, %v1968_v15  ;;  %v3751_v42 = vpop.f32.mrb[4].mxu0  ;;  %v2156_v20 = vsel %vm2030_vm4, %v1967_v31, %v2093_v34 }
 0x177   : > { %v2159_v18 = vsel %vm2033_vm5, %v1970_v29, %v2096_v16  ;;  %v3883_v49 = vadd.f32 %v3751_v42, %v4407_v25  ;;  %v1659_v47 = vpop.f32.mrb[5].mxu0 }
 0x178   : > { %v2220_v37 = vpack.c.bf16 %v2159_v18, %v2158_v44  ;;  %v2157_v54 = vsel %vm2031_vm6, %v1968_v15, %v2094_v41  ;;  %v3884_v33 = vadd.f32 %v1659_v47, %v4409_v26  ;;  %v3752_v27 = vpop.f32.mrb[6].mxu0 }
 0x179   : > { %v1973_v39 = vadd.f32 %v3883_v49, %v4544_v43  ;;  %v3885_v24 = vadd.f32 %v3752_v27, %v4411_v28  ;;  %v1662_v23 = vpop.f32.mrb[7].mxu0  ;;  %v2219_v22 = vpack.c.bf16 %v2157_v54, %v2156_v20 }
 0x17a   : > { %v1971_v21 = vadd.f32 %v3884_v33, %v4544_v43  ;;  %v3886_v29 = vadd.f32 %v1662_v23, %v4413_v30 }
 0x17b   : > { %v2099_v32 = vmul.f32 0.05, %v1973_v39  ;;  %v1974_v25 = vadd.f32 %v3885_v24, %v4544_v43  ;;  %3815 = vmatprep.mubr.msk.bf16.mxu1 %vm2282_vm7, %v2219_v22  ;;  %vm2036_vm8 = vcmp.gt.f32.partialorder %v1973_v39, 0.0 }
 0x17c   : > { %v2097_v34 = vmul.f32 0.05, %v1971_v21  ;;  %v1972_v26 = vadd.f32 %v3886_v29, %v4544_v43  ;;  %3816 = vmatmul.mubr.msk.bf16.vlgmr.msra.gmra.mrb[64].mxu1 %vm2282_vm7, %v2220_v37  ;;  %vm2034_vm9 = vcmp.gt.f32.partialorder %v1971_v21, 0.0 }
 0x17d   : > { %vm2037_vm10 = vcmp.gt.f32.partialorder %v1974_v25, 0.0  ;;  %v2100_v28 = vmul.f32 0.05, %v1974_v25  ;;  %v2162_v31 = vsel %vm2036_vm8, %v1973_v39, %v2099_v32 }
 0x17e   : > { %vm2035_vm11 = vcmp.gt.f32.partialorder %v1972_v26, 0.0  ;;  %v2098_v27 = vmul.f32 0.05, %v1972_v26  ;;  %v3755_v54 = vpop.f32.mrb[8].mxu0  ;;  %v2160_v24 = vsel %vm2034_vm9, %v1971_v21, %v2097_v34 }
 0x17f   : > { %v2163_v51 = vsel %vm2037_vm10, %v1974_v25, %v2100_v28  ;;  %v3887_v30 = vadd.f32 %v3755_v54, %v4421_v35  ;;  %v1675_v23 = vpop.f32.mrb[9].mxu0 }
 0x180   : > { %v2161_v15 = vsel %vm2035_vm11, %v1972_v26, %v2098_v27  ;;  %v3888_v22 = vadd.f32 %v1675_v23, %v4423_v36  ;;  %v3756_v16 = vpop.f32.mrb[10].mxu0  ;;  %v2222_v41 = vpack.c.bf16 %v2163_v51, %v2162_v31 }
 0x181   : > { %v1977_v42 = vadd.f32 %v3887_v30, %v4544_v43  ;;  %v3889_v44 = vadd.f32 %v3756_v16, %v4425_v38  ;;  %v1678_v18 = vpop.f32.mrb[11].mxu0  ;;  %v2221_v49 = vpack.c.bf16 %v2161_v15, %v2160_v24 }
 0x182   : > { %v1975_v47 = vadd.f32 %v3888_v22, %v4544_v43  ;;  %v3890_v20 = vadd.f32 %v1678_v18, %v4427_v40 }
 0x183   : > { %v2103_v37 = vmul.f32 0.05, %v1977_v42  ;;  %v1978_v35 = vadd.f32 %v3889_v44, %v4544_v43  ;;  %3819 = vmatprep.mubr.msk.bf16.mxu1 %vm2282_vm7, %v2221_v49  ;;  %vm2040_vm12 = vcmp.gt.f32.partialorder %v1977_v42, 0.0 }
 0x184   : > { %v2101_v21 = vmul.f32 0.05, %v1975_v47  ;;  %v1976_v36 = vadd.f32 %v3890_v20, %v4544_v43  ;;  %3820 = vmatmul.mubr.msk.bf16.gmra.mrb[68].mxu1 %vm2282_vm7, %v2222_v41  ;;  %vm2038_vm13 = vcmp.gt.f32.partialorder %v1975_v47, 0.0 }
 0x185   : > { %vm2041_vm14 = vcmp.gt.f32.partialorder %v1978_v35, 0.0  ;;  %v2104_v38 = vmul.f32 0.05, %v1978_v35  ;;  %v2166_v29 = vsel %vm2040_vm12, %v1977_v42, %v2103_v37 }
 0x186   : > { %vm2039_vm15 = vcmp.gt.f32.partialorder %v1976_v36, 0.0  ;;  %v2102_v33 = vmul.f32 0.05, %v1976_v36  ;;  %v3759_v39 = vpop.f32.mrb[12].mxu0  ;;  %v2164_v34 = vsel %vm2038_vm13, %v1975_v47, %v2101_v21 }
 0x187   : > { %v2167_v32 = vsel %vm2041_vm14, %v1978_v35, %v2104_v38  ;;  %v3891_v40 = vadd.f32 %v3759_v39, %v4435_v45  ;;  %v1691_v25 = vpop.f32.mrb[13].mxu0 }
 0x188   : > { %v2165_v26 = vsel %vm2039_vm15, %v1976_v36, %v2102_v33  ;;  %v3892_v28 = vadd.f32 %v1691_v25, %v4437_v46  ;;  %v3760_v27 = vpop.f32.mrb[14].mxu0  ;;  %v2224_v54 = vpack.c.bf16 %v2167_v32, %v2166_v29 }
 0x189   : > { %v1981_v31 = vadd.f32 %v3891_v40, %v4544_v43  ;;  %v3893_v51 = vadd.f32 %v3760_v27, %v4439_v48  ;;  %v1694_v30 = vpop.f32.mrb[15].mxu0  ;;  %v2223_v23 = vpack.c.bf16 %v2165_v26, %v2164_v34 }
 0x18a   : > { %v1979_v24 = vadd.f32 %v3892_v28, %v4544_v43  ;;  %v3894_v15 = vadd.f32 %v1694_v30, %v4441_v50 }
 0x18b   : > { %v2107_v22 = vmul.f32 0.05, %v1981_v31  ;;  %v1982_v45 = vadd.f32 %v3893_v51, %v4544_v43  ;;  %3823 = vmatprep.mubr.msk.bf16.mxu1 %vm2282_vm7, %v2223_v23  ;;  %vm2044_vm0 = vcmp.gt.f32.partialorder %v1981_v31, 0.0 }
 0x18c   : > { %v2105_v16 = vmul.f32 0.05, %v1979_v24  ;;  %v1980_v46 = vadd.f32 %v3894_v15, %v4544_v43  ;;  %3824 = vmatmul.mubr.msk.bf16.gmra.mrb[72].mxu1 %vm2282_vm7, %v2224_v54  ;;  %vm2042_vm1 = vcmp.gt.f32.partialorder %v1979_v24, 0.0 }
 0x18d   : > { %vm2045_vm2 = vcmp.gt.f32.partialorder %v1982_v45, 0.0  ;;  %v2108_v48 = vmul.f32 0.05, %v1982_v45  ;;  %v2170_v44 = vsel %vm2044_vm0, %v1981_v31, %v2107_v22 }
 0x18e   : > { %vm2043_vm3 = vcmp.gt.f32.partialorder %v1980_v46, 0.0  ;;  %v2106_v41 = vmul.f32 0.05, %v1980_v46  ;;  %v3763_v42 = vpop.f32.mrb[16].mxu0  ;;  %v2168_v47 = vsel %vm2042_vm1, %v1979_v24, %v2105_v16 }
 0x18f   : > { %v2171_v18 = vsel %vm2045_vm2, %v1982_v45, %v2108_v48  ;;  %v3895_v50 = vadd.f32 %v3763_v42, %v4446_v52  ;;  %v1707_v49 = vpop.f32.mrb[17].mxu0 }
 0x190   : > { %v2169_v20 = vsel %vm2043_vm3, %v1980_v46, %v2106_v41  ;;  %v3896_v37 = vadd.f32 %v1707_v49, %v4448_v53  ;;  %v3764_v35 = vpop.f32.mrb[18].mxu0  ;;  %v2226_v21 = vpack.c.bf16 %v2171_v18, %v2170_v44 }
 0x191   : > { %v1985_v36 = vadd.f32 %v3895_v50, %v4544_v43  ;;  %v3897_v38 = vadd.f32 %v3764_v35, %v4450_v55  ;;  %v1710_v33 = vpop.f32.mrb[19].mxu0  ;;  %v2225_v39 = vpack.c.bf16 %v2169_v20, %v2168_v47 }
 0x192   : > { %v1983_v29 = vadd.f32 %v3896_v37, %v4544_v43  ;;  %v3898_v32 = vadd.f32 %v1710_v33, %v4452_v56 }
 0x193   : > { %v2111_v40 = vmul.f32 0.05, %v1985_v36  ;;  %v1986_v52 = vadd.f32 %v3897_v38, %v4544_v43  ;;  %3827 = vmatprep.mubr.msk.bf16.mxu1 %vm2282_vm7, %v2225_v39  ;;  %vm2048_vm4 = vcmp.gt.f32.partialorder %v1985_v36, 0.0 }
 0x194   : > { %v2109_v25 = vmul.f32 0.05, %v1983_v29  ;;  %v1984_v53 = vadd.f32 %v3898_v32, %v4544_v43  ;;  %3828 = vmatmul.mubr.msk.bf16.gmra.mrb[76].mxu1 %vm2282_vm7, %v2226_v21  ;;  %vm2046_vm5 = vcmp.gt.f32.partialorder %v1983_v29, 0.0 }
 0x195   : > { %vm2049_vm6 = vcmp.gt.f32.partialorder %v1986_v52, 0.0  ;;  %v2112_v55 = vmul.f32 0.05, %v1986_v52  ;;  %v2174_v28 = vsel %vm2048_vm4, %v1985_v36, %v2111_v40 }
 0x196   : > { %vm2047_vm8 = vcmp.gt.f32.partialorder %v1984_v53, 0.0  ;;  %v2110_v34 = vmul.f32 0.05, %v1984_v53  ;;  %v3767_v26 = vpop.f32.mrb[20].mxu0  ;;  %v2172_v31 = vsel %vm2046_vm5, %v1983_v29, %v2109_v25 }
 0x197   : > { %v2175_v27 = vsel %vm2049_vm6, %v1986_v52, %v2112_v55  ;;  %v3899_v56 = vadd.f32 %v3767_v26, %v4455_v57  ;;  %v1723_v54 = vpop.f32.mrb[21].mxu0 }
 0x198   : > { %v2173_v51 = vsel %vm2047_vm8, %v1984_v53, %v2110_v34  ;;  %v3900_v30 = vadd.f32 %v1723_v54, %v4457_v58  ;;  %v3768_v23 = vpop.f32.mrb[22].mxu0  ;;  %v2228_v24 = vpack.c.bf16 %v2175_v27, %v2174_v28 }
 0x199   : > { %v1989_v15 = vadd.f32 %v3899_v56, %v4544_v43  ;;  %v3901_v22 = vadd.f32 %v3768_v23, %v4459_v59  ;;  %v1726_v45 = vpop.f32.mrb[23].mxu0  ;;  %v2227_v16 = vpack.c.bf16 %v2173_v51, %v2172_v31 }
 0x19a   : > { %v1987_v46 = vadd.f32 %v3900_v30, %v4544_v43  ;;  %v3902_v48 = vadd.f32 %v1726_v45, %v4461_v60 }
 0x19b   : > { %v2115_v41 = vmul.f32 0.05, %v1989_v15  ;;  %v1990_v57 = vadd.f32 %v3901_v22, %v4544_v43  ;;  %3831 = vmatprep.mubr.msk.bf16.mxu1 %vm2282_vm7, %v2227_v16  ;;  %vm2052_vm9 = vcmp.gt.f32.partialorder %v1989_v15, 0.0 }
 0x19c   : > { %v2113_v42 = vmul.f32 0.05, %v1987_v46  ;;  %v1988_v58 = vadd.f32 %v3902_v48, %v4544_v43  ;;  %3832 = vmatmul.mubr.msk.bf16.gmra.mrb[80].mxu1 %vm2282_vm7, %v2228_v24  ;;  %vm2050_vm10 = vcmp.gt.f32.partialorder %v1987_v46, 0.0 }
 0x19d   : > { %vm2053_vm11 = vcmp.gt.f32.partialorder %v1990_v57, 0.0  ;;  %v2116_v59 = vmul.f32 0.05, %v1990_v57  ;;  %v2178_v50 = vsel %vm2052_vm9, %v1989_v15, %v2115_v41 }
 0x19e   : > { %vm2051_vm12 = vcmp.gt.f32.partialorder %v1988_v58, 0.0  ;;  %v2114_v44 = vmul.f32 0.05, %v1988_v58  ;;  %v3771_v18 = vpop.f32.mrb[24].mxu0  ;;  %v2176_v20 = vsel %vm2050_vm10, %v1987_v46, %v2113_v42 }
 0x19f   : > { %v2179_v49 = vsel %vm2053_vm11, %v1990_v57, %v2116_v59  ;;  %v3903_v60 = vadd.f32 %v3771_v18, %v4463_v61  ;;  %v1739_v47 = vpop.f32.mrb[25].mxu0 }
 0x1a0   : > { %v2177_v37 = vsel %vm2051_vm12, %v1988_v58, %v2114_v44  ;;  %v3904_v35 = vadd.f32 %v1739_v47, %v4465_v62  ;;  %v3772_v21 = vpop.f32.mrb[26].mxu0  ;;  %v2230_v36 = vpack.c.bf16 %v2179_v49, %v2178_v50 }
 0x1a1   : > { %v1993_v38 = vadd.f32 %v3903_v60, %v4544_v43  ;;  %v3905_v33 = vadd.f32 %v3772_v21, %v4467_v63  ;;  %v1742_v39 = vpop.f32.mrb[27].mxu0  ;;  %v2229_v29 = vpack.c.bf16 %v2177_v37, %v2176_v20 }
 0x1a2   : > { %v1991_v32 = vadd.f32 %v3904_v35, %v4544_v43  ;;  %v3906_v40 = vadd.f32 %v1742_v39, %v4469_v0 }
 0x1a3   : > { %v2119_v52 = vmul.f32 0.05, %v1993_v38  ;;  %v1994_v61 = vadd.f32 %v3905_v33, %v4544_v43  ;;  %3835 = vmatprep.mubr.msk.bf16.mxu1 %vm2282_vm7, %v2229_v29  ;;  %vm2056_vm13 = vcmp.gt.f32.partialorder %v1993_v38, 0.0 }
 0x1a4   : > { %v2117_v25 = vmul.f32 0.05, %v1991_v32  ;;  %v1992_v62 = vadd.f32 %v3906_v40, %v4544_v43  ;;  %3836 = vmatmul.mubr.msk.bf16.gmra.mrb[84].mxu1 %vm2282_vm7, %v2230_v36  ;;  %vm2054_vm14 = vcmp.gt.f32.partialorder %v1991_v32, 0.0 }
 0x1a5   : > { %vm2057_vm15 = vcmp.gt.f32.partialorder %v1994_v61, 0.0  ;;  %v2120_v63 = vmul.f32 0.05, %v1994_v61  ;;  %v2182_v34 = vsel %vm2056_vm13, %v1993_v38, %v2119_v52 }
 0x1a6   : > { %vm2055_vm0 = vcmp.gt.f32.partialorder %v1992_v62, 0.0  ;;  %v2118_v53 = vmul.f32 0.05, %v1992_v62  ;;  %v3775_v55 = vpop.f32.mrb[28].mxu0  ;;  %v2180_v27 = vsel %vm2054_vm14, %v1991_v32, %v2117_v25 }
 0x1a7   : > { %v2183_v26 = vsel %vm2057_vm15, %v1994_v61, %v2120_v63  ;;  %v3907_v0 = vadd.f32 %v3775_v55, %v4471_v1  ;;  %v1755_v28 = vpop.f32.mrb[29].mxu0 }
 0x1a8   : > { %v2181_v56 = vsel %vm2055_vm0, %v1992_v62, %v2118_v53  ;;  %v3908_v54 = vadd.f32 %v1755_v28, %v4473_v2  ;;  %v3776_v31 = vpop.f32.mrb[30].mxu0  ;;  %v2232_v51 = vpack.c.bf16 %v2183_v26, %v2182_v34 }
 0x1a9   : > { %v1997_v30 = vadd.f32 %v3907_v0, %v4544_v43  ;;  %v3909_v23 = vadd.f32 %v3776_v31, %v4475_v3  ;;  %v1758_v24 = vpop.f32.mrb[31].mxu0  ;;  %v2231_v15 = vpack.c.bf16 %v2181_v56, %v2180_v27 }
 0x1aa   : > { %v1995_v22 = vadd.f32 %v3908_v54, %v4544_v43  ;;  %v3910_v45 = vadd.f32 %v1758_v24, %v4477_v4 }
 0x1ab   : > { %v2123_v16 = vmul.f32 0.05, %v1997_v30  ;;  %v1998_v1 = vadd.f32 %v3909_v23, %v4544_v43  ;;  %3839 = vmatprep.mubr.msk.bf16.mxu1 %vm2282_vm7, %v2231_v15  ;;  %vm2060_vm1 = vcmp.gt.f32.partialorder %v1997_v30, 0.0 }
 0x1ac   : > { %v2121_v46 = vmul.f32 0.05, %v1995_v22  ;;  %v1996_v2 = vadd.f32 %v3910_v45, %v4544_v43  ;;  %3840 = vmatmul.mubr.msk.bf16.gmra.mrb[88].mxu1 %vm2282_vm7, %v2232_v51  ;;  %vm2058_vm2 = vcmp.gt.f32.partialorder %v1995_v22, 0.0 }
 0x1ad   : > { %vm2061_vm3 = vcmp.gt.f32.partialorder %v1998_v1, 0.0  ;;  %v2124_v3 = vmul.f32 0.05, %v1998_v1  ;;  %v2186_v57 = vsel %vm2060_vm1, %v1997_v30, %v2123_v16 }
 0x1ae   : > { %vm2059_vm4 = vcmp.gt.f32.partialorder %v1996_v2, 0.0  ;;  %v2122_v48 = vmul.f32 0.05, %v1996_v2  ;;  %v3779_v41 = vpop.f32.mrb[32].mxu0  ;;  %v2184_v59 = vsel %vm2058_vm2, %v1995_v22, %v2121_v46 }
 0x1af   : > { %v2187_v42 = vsel %vm2061_vm3, %v1998_v1, %v2124_v3  ;;  %v3911_v4 = vadd.f32 %v3779_v41, %v4479_v5  ;;  %v1771_v58 = vpop.f32.mrb[33].mxu0 }
 0x1b0   : > { %v2185_v44 = vsel %vm2059_vm4, %v1996_v2, %v2122_v48  ;;  %v3912_v18 = vadd.f32 %v1771_v58, %v4481_v6  ;;  %v3780_v50 = vpop.f32.mrb[34].mxu0  ;;  %v2234_v49 = vpack.c.bf16 %v2187_v42, %v2186_v57 }
 0x1b1   : > { %v2001_v60 = vadd.f32 %v3911_v4, %v4544_v43  ;;  %v3913_v47 = vadd.f32 %v3780_v50, %v4483_v7  ;;  %v1774_v20 = vpop.f32.mrb[35].mxu0  ;;  %v2233_v37 = vpack.c.bf16 %v2185_v44, %v2184_v59 }
 0x1b2   : > { %v1999_v35 = vadd.f32 %v3912_v18, %v4544_v43  ;;  %v3914_v21 = vadd.f32 %v1774_v20, %v4485_v8 }
 0x1b3   : > { %v2127_v36 = vmul.f32 0.05, %v2001_v60  ;;  %v2002_v5 = vadd.f32 %v3913_v47, %v4544_v43  ;;  %3843 = vmatprep.mubr.msk.bf16.mxu1 %vm2282_vm7, %v2233_v37  ;;  %vm2064_vm5 = vcmp.gt.f32.partialorder %v2001_v60, 0.0  ;;  %v5135_v47 = vld [vmem:[#allocation4_spill] sm:$0xff] }
 0x1b4   : > { %v2125_v38 = vmul.f32 0.05, %v1999_v35  ;;  %v2000_v6 = vadd.f32 %v3914_v21, %v4544_v43  ;;  %3844 = vmatmul.mubr.msk.bf16.gmra.mrb[92].mxu1 %vm2282_vm7, %v2234_v49  ;;  %vm2062_vm6 = vcmp.gt.f32.partialorder %v1999_v35, 0.0 }
 0x1b5   : > { %vm2065_vm8 = vcmp.gt.f32.partialorder %v2002_v5, 0.0  ;;  %v2128_v7 = vmul.f32 0.05, %v2002_v5  ;;  %v2190_v29 = vsel %vm2064_vm5, %v2001_v60, %v2127_v36  ;;  %v5136_v36 = vld [vmem:[#allocation5_spill] sm:$0xff] }
 0x1b6   : > { %vm2063_vm9 = vcmp.gt.f32.partialorder %v2000_v6, 0.0  ;;  %v2126_v33 = vmul.f32 0.05, %v2000_v6  ;;  %v3783_v39 = vpop.f32.mrb[36].mxu0  ;;  %v2188_v52 = vsel %vm2062_vm6, %v1999_v35, %v2125_v38 }
 0x1b7   : > { %v2191_v32 = vsel %vm2065_vm8, %v2002_v5, %v2128_v7  ;;  %v3915_v8 = vadd.f32 %v3783_v39, %v4487_v9  ;;  %v1787_v40 = vpop.f32.mrb[37].mxu0 }
 0x1b8   : > { %v2189_v61 = vsel %vm2063_vm9, %v2000_v6, %v2126_v33  ;;  %v3916_v25 = vadd.f32 %v1787_v40, %v4489_v10  ;;  %v3784_v62 = vpop.f32.mrb[38].mxu0  ;;  %v2236_v63 = vpack.c.bf16 %v2191_v32, %v2190_v29  ;;  %v5137_v33 = vld [vmem:[#allocation6_spill] sm:$0xff] }
 0x1b9   : > { %v2005_v53 = vadd.f32 %v3915_v8, %v4544_v43  ;;  %v3917_v55 = vadd.f32 %v3784_v62, %v4491_v11  ;;  %v1790_v34 = vpop.f32.mrb[39].mxu0  ;;  %v2235_v26 = vpack.c.bf16 %v2189_v61, %v2188_v52 }
 0x1ba   : > { %v2003_v0 = vadd.f32 %v3916_v25, %v4544_v43  ;;  %v3918_v28 = vadd.f32 %v1790_v34, %v4493_v12 }
 0x1bb   : > { %v2131_v27 = vmul.f32 0.05, %v2005_v53  ;;  %v2006_v9 = vadd.f32 %v3917_v55, %v4544_v43  ;;  %3847 = vmatprep.mubr.msk.bf16.mxu1 %vm2282_vm7, %v2235_v26  ;;  %vm2068_vm10 = vcmp.gt.f32.partialorder %v2005_v53, 0.0 }
 0x1bc   : > { %v2129_v56 = vmul.f32 0.05, %v2003_v0  ;;  %v2004_v10 = vadd.f32 %v3918_v28, %v4544_v43  ;;  %3848 = vmatmul.mubr.msk.bf16.gmra.mrb[96].mxu1 %vm2282_vm7, %v2236_v63  ;;  %vm2066_vm11 = vcmp.gt.f32.partialorder %v2003_v0, 0.0  ;;  %v5139_v28 = vld [vmem:[#allocation8_spill] sm:$0xff] }
 0x1bd   : > { %vm2069_vm12 = vcmp.gt.f32.partialorder %v2006_v9, 0.0  ;;  %v2132_v11 = vmul.f32 0.05, %v2006_v9  ;;  %v2194_v51 = vsel %vm2068_vm10, %v2005_v53, %v2131_v27  ;;  %v5138_v53 = vld [vmem:[#allocation7_spill] sm:$0xff] }
 0x1be   : > { %vm2067_vm13 = vcmp.gt.f32.partialorder %v2004_v10, 0.0  ;;  %v2130_v54 = vmul.f32 0.05, %v2004_v10  ;;  %v3787_v31 = vpop.f32.mrb[40].mxu0  ;;  %v2192_v24 = vsel %vm2066_vm11, %v2003_v0, %v2129_v56 }
 0x1bf   : > { %v2195_v30 = vsel %vm2069_vm12, %v2006_v9, %v2132_v11  ;;  %v3919_v12 = vadd.f32 %v3787_v31, %v4495_v13  ;;  %v1803_v23 = vpop.f32.mrb[41].mxu0  ;;  %v5140_v11 = vld [vmem:[#allocation9_spill] sm:$0xff] }
 0x1c0   : > { %v2193_v15 = vsel %vm2067_vm13, %v2004_v10, %v2130_v54  ;;  %v3920_v22 = vadd.f32 %v1803_v23, %v4497_v14  ;;  %v3788_v45 = vpop.f32.mrb[42].mxu0  ;;  %v2238_v16 = vpack.c.bf16 %v2195_v30, %v2194_v51 }
 0x1c1   : > { %v2009_v1 = vadd.f32 %v3919_v12, %v4544_v43  ;;  %v3921_v46 = vadd.f32 %v3788_v45, %v4499_v17  ;;  %v1806_v2 = vpop.f32.mrb[43].mxu0  ;;  %v2237_v3 = vpack.c.bf16 %v2193_v15, %v2192_v24  ;;  %v5141_v12 = vld [vmem:[#allocation10_spill] sm:$0xff] }
 0x1c2   : > { %v2007_v48 = vadd.f32 %v3920_v22, %v4544_v43  ;;  %v3922_v41 = vadd.f32 %v1806_v2, %v4501_v19  ;;  %v5134_v19 = vld [vmem:[#allocation3_spill] sm:$0xff] }
 0x1c3   : > { %v2135_v57 = vmul.f32 0.05, %v2009_v1  ;;  %v2010_v13 = vadd.f32 %v3921_v46, %v4544_v43  ;;  %3851 = vmatprep.mubr.msk.bf16.mxu1 %vm2282_vm7, %v2237_v3  ;;  %vm2072_vm14 = vcmp.gt.f32.partialorder %v2009_v1, 0.0 }
 0x1c4   : > { %v2133_v42 = vmul.f32 0.05, %v2007_v48  ;;  %v2008_v14 = vadd.f32 %v3922_v41, %v4544_v43  ;;  %3852 = vmatmul.mubr.msk.bf16.gmra.mrb[100].mxu1 %vm2282_vm7, %v2238_v16  ;;  %vm2070_vm15 = vcmp.gt.f32.partialorder %v2007_v48, 0.0 }
 0x1c5   : > { %vm2073_vm0 = vcmp.gt.f32.partialorder %v2010_v13, 0.0  ;;  %v2136_v17 = vmul.f32 0.05, %v2010_v13  ;;  %v2198_v59 = vsel %vm2072_vm14, %v2009_v1, %v2135_v57 }
 0x1c6   : > { %vm2071_vm1 = vcmp.gt.f32.partialorder %v2008_v14, 0.0  ;;  %v2134_v4 = vmul.f32 0.05, %v2008_v14  ;;  %v3791_v58 = vpop.f32.mrb[44].mxu0  ;;  %v2196_v49 = vsel %vm2070_vm15, %v2007_v48, %v2133_v42  ;;  %v5142_v48 = vld [vmem:[#allocation11_spill] sm:$0xff] }
 0x1c7   : > { %v2199_v44 = vsel %vm2073_vm0, %v2010_v13, %v2136_v17  ;;  %v3923_v18 = vadd.f32 %v3791_v58, %v5134_v19  ;;  %v1819_v50 = vpop.f32.mrb[45].mxu0 }
 0x1c8   : > { %v2197_v60 = vsel %vm2071_vm1, %v2008_v14, %v2134_v4  ;;  %v3924_v20 = vadd.f32 %v1819_v50, %v5135_v47  ;;  %v3792_v37 = vpop.f32.mrb[46].mxu0  ;;  %v2240_v35 = vpack.c.bf16 %v2199_v44, %v2198_v59  ;;  %v5143_v14 = vld [vmem:[#allocation12_spill] sm:$0xff]  ;;  %v5144_v44 = vld [vmem:[#allocation13_spill] sm:$0xff] }
 0x1c9   : > { %v2013_v21 = vadd.f32 %v3923_v18, %v4544_v43  ;;  %v3925_v5 = vadd.f32 %v3792_v37, %v5136_v36  ;;  %v1822_v38 = vpop.f32.mrb[47].mxu0  ;;  %v2239_v6 = vpack.c.bf16 %v2197_v60, %v2196_v49  ;;  %v5145_v60 = vld [vmem:[#allocation14_spill] sm:$0xff] }
 0x1ca   : > { %v2011_v7 = vadd.f32 %v3924_v20, %v4544_v43  ;;  %v3926_v39 = vadd.f32 %v1822_v38, %v5137_v33  ;;  %v5146_v33 = vld [vmem:[#allocation15_spill] sm:$0xff] }
 0x1cb   : > { %v2139_v29 = vmul.f32 0.05, %v2013_v21  ;;  %v2014_v32 = vadd.f32 %v3925_v5, %v4544_v43  ;;  %3855 = vmatprep.mubr.msk.bf16.mxu1 %vm2282_vm7, %v2239_v6  ;;  %vm2076_vm2 = vcmp.gt.f32.partialorder %v2013_v21, 0.0 }
 0x1cc   : > { %v2137_v8 = vmul.f32 0.05, %v2011_v7  ;;  %v2012_v40 = vadd.f32 %v3926_v39, %v4544_v43  ;;  %3856 = vmatmul.mubr.msk.bf16.gmra.mrb[104].mxu1 %vm2282_vm7, %v2240_v35  ;;  %vm2074_vm3 = vcmp.gt.f32.partialorder %v2011_v7, 0.0 }
 0x1cd   : > { %vm2077_vm4 = vcmp.gt.f32.partialorder %v2014_v32, 0.0  ;;  %v2140_v52 = vmul.f32 0.05, %v2014_v32  ;;  %v2202_v62 = vsel %vm2076_vm2, %v2013_v21, %v2139_v29 }
 0x1ce   : > { %vm2075_vm5 = vcmp.gt.f32.partialorder %v2012_v40, 0.0  ;;  %v2138_v61 = vmul.f32 0.05, %v2012_v40  ;;  %v3795_v25 = vpop.f32.mrb[48].mxu0  ;;  %v2200_v26 = vsel %vm2074_vm3, %v2011_v7, %v2137_v8 }
 0x1cf   : > { %v2203_v63 = vsel %vm2077_vm4, %v2014_v32, %v2140_v52  ;;  %v3927_v55 = vadd.f32 %v3795_v25, %v5138_v53  ;;  %v1835_v34 = vpop.f32.mrb[49].mxu0 }
 0x1d0   : > { %v2201_v0 = vsel %vm2075_vm5, %v2012_v40, %v2138_v61  ;;  %v3928_v27 = vadd.f32 %v1835_v34, %v5139_v28  ;;  %v3796_v9 = vpop.f32.mrb[50].mxu0  ;;  %v2242_v56 = vpack.c.bf16 %v2203_v63, %v2202_v62  ;;  %v5147_v40 = vld [vmem:[#allocation16_spill] sm:$0xff]  ;;  %v5148_v63 = vld [vmem:[#allocation17_spill] sm:$0xff] }
 0x1d1   : > { %v2017_v10 = vadd.f32 %v3927_v55, %v4544_v43  ;;  %v3929_v54 = vadd.f32 %v3796_v9, %v5140_v11  ;;  %v1838_v31 = vpop.f32.mrb[51].mxu0  ;;  %v2241_v51 = vpack.c.bf16 %v2201_v0, %v2200_v26  ;;  %v5149_v0 = vld [vmem:[#allocation18_spill] sm:$0xff] }
 0x1d2   : > { %v2015_v30 = vadd.f32 %v3928_v27, %v4544_v43  ;;  %v3930_v23 = vadd.f32 %v1838_v31, %v5141_v12  ;;  %v5150_v12 = vld [vmem:[#allocation19_spill] sm:$0xff] }
 0x1d3   : > { %v2143_v24 = vmul.f32 0.05, %v2017_v10  ;;  %v2018_v15 = vadd.f32 %v3929_v54, %v4544_v43  ;;  %3859 = vmatprep.mubr.msk.bf16.mxu1 %vm2282_vm7, %v2241_v51  ;;  %vm2080_vm6 = vcmp.gt.f32.partialorder %v2017_v10, 0.0 }
 0x1d4   : > { %v2141_v22 = vmul.f32 0.05, %v2015_v30  ;;  %v2016_v45 = vadd.f32 %v3930_v23, %v4544_v43  ;;  %3860 = vmatmul.mubr.msk.bf16.gmra.mrb[108].mxu1 %vm2282_vm7, %v2242_v56  ;;  %vm2078_vm8 = vcmp.gt.f32.partialorder %v2015_v30, 0.0 }
 0x1d5   : > { %vm2081_vm9 = vcmp.gt.f32.partialorder %v2018_v15, 0.0  ;;  %v2144_v16 = vmul.f32 0.05, %v2018_v15  ;;  %v2206_v2 = vsel %vm2080_vm6, %v2017_v10, %v2143_v24 }
 0x1d6   : > { %vm2079_vm10 = vcmp.gt.f32.partialorder %v2016_v45, 0.0  ;;  %v2142_v1 = vmul.f32 0.05, %v2016_v45  ;;  %v3799_v46 = vpop.f32.mrb[52].mxu0  ;;  %v2204_v13 = vsel %vm2078_vm8, %v2015_v30, %v2141_v22 }
 0x1d7   : > { %v2207_v3 = vsel %vm2081_vm9, %v2018_v15, %v2144_v16  ;;  %v3931_v41 = vadd.f32 %v3799_v46, %v5142_v48  ;;  %v1851_v57 = vpop.f32.mrb[53].mxu0 }
 0x1d8   : > { %v2205_v42 = vsel %vm2079_vm10, %v2016_v45, %v2142_v1  ;;  %v3932_v17 = vadd.f32 %v1851_v57, %v5143_v14  ;;  %v3800_v4 = vpop.f32.mrb[54].mxu0  ;;  %v2244_v58 = vpack.c.bf16 %v2207_v3, %v2206_v2  ;;  %v5151_v45 = vld [vmem:[#allocation20_spill] sm:$0xff]  ;;  %v5152_v57 = vld [vmem:[#allocation21_spill] sm:$0xff] }
 0x1d9   : > { %v2021_v59 = vadd.f32 %v3931_v41, %v4544_v43  ;;  %v3933_v19 = vadd.f32 %v3800_v4, %v5144_v44  ;;  %v1854_v18 = vpop.f32.mrb[55].mxu0  ;;  %v2243_v50 = vpack.c.bf16 %v2205_v42, %v2204_v13 }
 0x1da   : > { %v2019_v49 = vadd.f32 %v3932_v17, %v4544_v43  ;;  %v3934_v47 = vadd.f32 %v1854_v18, %v5145_v60 }
 0x1db   : > { %v2147_v20 = vmul.f32 0.05, %v2021_v59  ;;  %v2022_v37 = vadd.f32 %v3933_v19, %v4544_v43  ;;  %3863 = vmatprep.mubr.msk.bf16.mxu1 %vm2282_vm7, %v2243_v50  ;;  %vm2084_vm11 = vcmp.gt.f32.partialorder %v2021_v59, 0.0  ;;  %v4707_v50 = vld [vmem:[%s5111_s8] ss:$0 sm:$0xff] }
 0x1dc   : > { %v2145_v35 = vmul.f32 0.05, %v2019_v49  ;;  %v2020_v21 = vadd.f32 %v3934_v47, %v4544_v43  ;;  %3864 = vmatmul.mubr.msk.bf16.gmra.mrb[112].mxu1 %vm2282_vm7, %v2244_v58  ;;  %vm2082_vm12 = vcmp.gt.f32.partialorder %v2019_v49, 0.0 }
 0x1dd   : > { %vm2085_vm13 = vcmp.gt.f32.partialorder %v2022_v37, 0.0  ;;  %v2148_v36 = vmul.f32 0.05, %v2022_v37  ;;  %v2210_v6 = vsel %vm2084_vm11, %v2021_v59, %v2147_v20 }
 0x1de   : > { %vm2083_vm14 = vcmp.gt.f32.partialorder %v2020_v21, 0.0  ;;  %v2146_v5 = vmul.f32 0.05, %v2020_v21  ;;  %v3803_v38 = vpop.f32.mrb[56].mxu0  ;;  %v2208_v32 = vsel %vm2082_vm12, %v2019_v49, %v2145_v35 }
 0x1df   : > { %v2211_v7 = vsel %vm2085_vm13, %v2022_v37, %v2148_v36  ;;  %v3935_v39 = vadd.f32 %v3803_v38, %v5146_v33  ;;  %v1867_v29 = vpop.f32.mrb[57].mxu0  ;;  %v4715_v36 = vld [vmem:[%s5112_s9] ss:$0 sm:$0xff] }
 0x1e0   : > { %v2209_v8 = vsel %vm2083_vm14, %v2020_v21, %v2146_v5  ;;  %v3936_v52 = vadd.f32 %v1867_v29, %v5147_v40  ;;  %v3804_v61 = vpop.f32.mrb[58].mxu0  ;;  %v2246_v25 = vpack.c.bf16 %v2211_v7, %v2210_v6 }
 0x1e1   : > { %v2025_v62 = vadd.f32 %v3935_v39, %v4544_v43  ;;  %v3937_v53 = vadd.f32 %v3804_v61, %v5148_v63  ;;  %v1870_v55 = vpop.f32.mrb[59].mxu0  ;;  %v2245_v34 = vpack.c.bf16 %v2209_v8, %v2208_v32 }
 0x1e2   : > { %v2023_v26 = vadd.f32 %v3936_v52, %v4544_v43  ;;  %v3938_v28 = vadd.f32 %v1870_v55, %v5149_v0 }
 0x1e3   : > { %v2151_v27 = vmul.f32 0.05, %v2025_v62  ;;  %v2026_v9 = vadd.f32 %v3937_v53, %v4544_v43  ;;  %3867 = vmatprep.mubr.msk.bf16.mxu1 %vm2282_vm7, %v2245_v34  ;;  %vm2088_vm15 = vcmp.gt.f32.partialorder %v2025_v62, 0.0 }
 0x1e4   : > { %v2149_v56 = vmul.f32 0.05, %v2023_v26  ;;  %v2024_v10 = vadd.f32 %v3938_v28, %v4544_v43  ;;  %3868 = vmatmul.mubr.msk.bf16.gmra.mrb[116].mxu1 %vm2282_vm7, %v2246_v25  ;;  %vm2086_vm0 = vcmp.gt.f32.partialorder %v2023_v26, 0.0 }
 0x1e5   : > { %vm2089_vm1 = vcmp.gt.f32.partialorder %v2026_v9, 0.0  ;;  %v2152_v11 = vmul.f32 0.05, %v2026_v9  ;;  %v2214_v51 = vsel %vm2088_vm15, %v2025_v62, %v2151_v27 }
 0x1e6   : > { %vm2087_vm2 = vcmp.gt.f32.partialorder %v2024_v10, 0.0  ;;  %v2150_v54 = vmul.f32 0.05, %v2024_v10  ;;  %v3807_v31 = vpop.f32.mrb[64].mxu0  ;;  %v2212_v15 = vsel %vm2086_vm0, %v2023_v26, %v2149_v56 }
 0x1e7   : > { %v2215_v30 = vsel %vm2089_vm1, %v2026_v9, %v2152_v11  ;;  %v1959_v23 = vadd.f32 %v3807_v31, %v5150_v12  ;;  %v1883_v24 = vpop.f32.mrb[65].mxu0 }
 0x1e8   : > { %v2213_v22 = vsel %vm2087_vm2, %v2024_v10, %v2150_v54  ;;  %v1957_v16 = vadd.f32 %v1883_v24, %v5151_v45  ;;  %v3808_v1 = vpop.f32.mrb[66].mxu0  ;;  %v2248_v46 = vpack.c.bf16 %v2215_v30, %v2214_v51 }
 0x1e9   : > { %v2029_v2 = vadd.f32 %v4544_v43, %v1959_v23  ;;  %v1886_v3 = vpop.f32.mrb[67].mxu0  ;;  %v2247_v48 = vpack.c.bf16 %v2213_v22, %v2212_v15 }
 0x1ea   : > { %v2027_v41 = vadd.f32 %v4544_v43, %v1957_v16  ;;  %v1958_v13 = vadd.f32 %v1886_v3, %v5152_v57 }
 0x1eb   : > { %v2155_v42 = vmul.f32 0.05, %v2029_v2  ;;  %3871 = vmatprep.mubr.msk.bf16.mxu1 %vm2282_vm7, %v2247_v48  ;;  %vm2092_vm3 = vcmp.gt.f32.partialorder %v2029_v2, 0.0 }
 0x1ec   : > { %v2153_v14 = vmul.f32 0.05, %v2027_v41  ;;  %v2028_v17 = vadd.f32 %v4544_v43, %v1958_v13  ;;  %3872 = vmatmul.mubr.msk.bf16.gmra.mrb[120].mxu1 %vm2282_vm7, %v2248_v46  ;;  %vm2090_vm4 = vcmp.gt.f32.partialorder %v2027_v41, 0.0 }
 0x1ed   : > { %v2218_v58 = vsel %vm2092_vm3, %v2029_v2, %v2155_v42 }
 0x1ee   : > { %vm2091_vm5 = vcmp.gt.f32.partialorder %v2028_v17, 0.0  ;;  %v2154_v4 = vmul.f32 0.05, %v2028_v17  ;;  %v2216_v59 = vsel %vm2090_vm4, %v2027_v41, %v2153_v14  ;;  %v2250_v18 = vpack.c.bf16 %v2218_v58, %v2218_v58 }
 0x1f0   : > { %v2217_v44 = vsel %vm2091_vm5, %v2028_v17, %v2154_v4 }
 0x1f1   : > { %v2249_v19 = vpack.c.bf16 %v2217_v44, %v2216_v59 }
 0x1f3   : > { %3875 = vmatprep.mubr.msk.bf16.mxu1 %vm2282_vm7, %v2249_v19 }
 0x1f4   : > { %3876 = vmatmul.mubr.msk.bf16.gmra.mrb[124].mxu1 %vm2282_vm7, %v2250_v18 }
 0x24f   : > { %v3817_v43 = vpop.f32.mrb[64].mxu1 }
 0x250   : > { %v2422_v49 = vadd.f32 %v3817_v43, %v4707_v50  ;;  %v2413_v60 = vpop.f32.mrb[65].mxu1 }
 0x251   : > { %v2414_v47 = vadd.f32 %v4707_v50, %v2413_v60  ;;  %v3818_v20 = vpop.f32.mrb[66].mxu1 }
 0x252   : > { %v2732_v37 = vmul.f32 0.05, %v2422_v49  ;;  %v2425_v35 = vadd.f32 %v3818_v20, %v4707_v50  ;;  %v2416_v21 = vpop.f32.mrb[67].mxu1  ;;  %vm2669_vm6 = vcmp.gt.f32.partialorder %v2422_v49, 0.0 }
 0x253   : > { %v2730_v5 = vmul.f32 0.05, %v2414_v47  ;;  %v2417_v38 = vadd.f32 %v4707_v50, %v2416_v21  ;;  %vm2667_vm8 = vcmp.gt.f32.partialorder %v2414_v47, 0.0 }
 0x254   : > { %vm2670_vm9 = vcmp.gt.f32.partialorder %v2425_v35, 0.0  ;;  %v2733_v6 = vmul.f32 0.05, %v2425_v35  ;;  %v2795_v7 = vsel %vm2669_vm6, %v2422_v49, %v2732_v37 }
 0x255   : > { %vm2668_vm10 = vcmp.gt.f32.partialorder %v2417_v38, 0.0  ;;  %v2731_v33 = vmul.f32 0.05, %v2417_v38  ;;  %v2865_v39 = vmul.f32 %v4715_v36, %v2795_v7  ;;  %v2793_v29 = vsel %vm2667_vm8, %v2414_v47, %v2730_v5 }
 0x256   : > { %v2863_v32 = vmul.f32 %v4715_v36, %v2793_v29  ;;  %v2796_v8 = vsel %vm2670_vm9, %v2425_v35, %v2733_v6 }
 0x257   : > { %v3821_v40 = vpop.f32.mrb[68].mxu1  ;;  %v2932_v52 = vsel %vm2282_vm7, %v2865_v39, 0.0  ;;  %v2866_v61 = vmul.f32 %v4715_v36, %v2796_v8  ;;  %v2794_v25 = vsel %vm2668_vm10, %v2417_v38, %v2731_v33 }
 0x258   : > { %v2438_v62 = vadd.f32 %v3821_v40, %v4707_v50  ;;  %2933 = vadd.xlane.f32.xlu1 %v2932_v52  ;;  %v2429_v63 = vpop.f32.mrb[69].mxu1  ;;  %v2926_v53 = vsel %vm2282_vm7, %v2863_v32, 0.0  ;;  %v2864_v55 = vmul.f32 %v4715_v36, %v2794_v25 }
 0x259   : > { %v2430_v34 = vadd.f32 %v4707_v50, %v2429_v63  ;;  %2927 = vadd.xlane.f32.xlu0 %v2926_v53  ;;  %v3822_v26 = vpop.f32.mrb[70].mxu1  ;;  %v2935_v10 = vsel %vm2282_vm7, %v2866_v61, 0.0 }
 0x25a   : > { %vm2673_vm11 = vcmp.gt.f32.partialorder %v2438_v62, 0.0  ;;  %v2736_v0 = vmul.f32 0.05, %v2438_v62  ;;  %v2441_v28 = vadd.f32 %v3822_v26, %v4707_v50  ;;  %v2432_v27 = vpop.f32.mrb[71].mxu1  ;;  %v2929_v54 = vsel %vm2282_vm7, %v2864_v55, 0.0 }
 0x25b   : > { %vm2671_vm12 = vcmp.gt.f32.partialorder %v2430_v34, 0.0  ;;  %v2734_v9 = vmul.f32 0.05, %v2430_v34  ;;  %v2433_v56 = vadd.f32 %v4707_v50, %v2432_v27 }
 0x25c   : > { %vm2674_vm13 = vcmp.gt.f32.partialorder %v2441_v28, 0.0  ;;  %v2737_v11 = vmul.f32 0.05, %v2441_v28  ;;  %2936 = vadd.xlane.f32.xlu1 %v2935_v10  ;;  %v2799_v31 = vsel %vm2673_vm11, %v2438_v62, %v2736_v0 }
 0x25d   : > { %vm2672_vm14 = vcmp.gt.f32.partialorder %v2433_v56, 0.0  ;;  %v2735_v51 = vmul.f32 0.05, %v2433_v56  ;;  %2930 = vadd.xlane.f32.xlu0 %v2929_v54  ;;  %v2869_v30 = vmul.f32 %v4715_v36, %v2799_v31  ;;  %v2797_v12 = vsel %vm2671_vm12, %v2430_v34, %v2734_v9 }
 0x25e   : > { %v2800_v23 = vsel %vm2674_vm13, %v2441_v28, %v2737_v11  ;;  %v2867_v45 = vmul.f32 %v4715_v36, %v2797_v12 }
 0x25f   : > { %v3825_v24 = vpop.f32.mrb[72].mxu1  ;;  %v2944_v15 = vsel %vm2282_vm7, %v2869_v30, 0.0  ;;  %v2870_v22 = vmul.f32 %v4715_v36, %v2800_v23  ;;  %v2798_v16 = vsel %vm2672_vm14, %v2433_v56, %v2735_v51 }
 0x260   : > { %v2454_v1 = vadd.f32 %v3825_v24, %v4707_v50  ;;  %v2445_v46 = vpop.f32.mrb[73].mxu1  ;;  %v2868_v2 = vmul.f32 %v4715_v36, %v2798_v16  ;;  %v2938_v4 = vsel %vm2282_vm7, %v2867_v45, 0.0 }
 0x261   : > { %v2446_v3 = vadd.f32 %v4707_v50, %v2445_v46  ;;  %2945 = vadd.xlane.f32.xlu0 %v2944_v15  ;;  %v3826_v48 = vpop.f32.mrb[74].mxu1  ;;  %v2947_v41 = vsel %vm2282_vm7, %v2870_v22, 0.0 }
 0x262   : > { %vm2677_vm15 = vcmp.gt.f32.partialorder %v2454_v1, 0.0  ;;  %v2740_v57 = vmul.f32 0.05, %v2454_v1  ;;  %v2457_v13 = vadd.f32 %v3826_v48, %v4707_v50  ;;  %2948 = vadd.xlane.f32.xlu1 %v2947_v41  ;;  %v2448_v42 = vpop.f32.mrb[75].mxu1  ;;  %v2941_v59 = vsel %vm2282_vm7, %v2868_v2, 0.0 }
 0x263   : > { %vm2675_vm0 = vcmp.gt.f32.partialorder %v2446_v3, 0.0  ;;  %v2738_v14 = vmul.f32 0.05, %v2446_v3  ;;  %v2449_v17 = vadd.f32 %v4707_v50, %v2448_v42 }
 0x264   : > { %vm2678_vm1 = vcmp.gt.f32.partialorder %v2457_v13, 0.0  ;;  %v2741_v58 = vmul.f32 0.05, %v2457_v13  ;;  %v2803_v44 = vsel %vm2677_vm15, %v2454_v1, %v2740_v57 }
 0x265   : > { %vm2676_vm2 = vcmp.gt.f32.partialorder %v2449_v17, 0.0  ;;  %v2739_v19 = vmul.f32 0.05, %v2449_v17  ;;  %2939 = vadd.xlane.f32.xlu0 %v2938_v4  ;;  %v2873_v18 = vmul.f32 %v4715_v36, %v2803_v44  ;;  %v2801_v43 = vsel %vm2675_vm0, %v2446_v3, %v2738_v14 }
 0x266   : > { %2942 = vadd.xlane.f32.xlu1 %v2941_v59  ;;  %v2804_v49 = vsel %vm2678_vm1, %v2457_v13, %v2741_v58  ;;  %v2871_v37 = vmul.f32 %v4715_v36, %v2801_v43 }
 0x267   : > { %v3829_v60 = vpop.f32.mrb[76].mxu1  ;;  %v2956_v47 = vsel %vm2282_vm7, %v2873_v18, 0.0  ;;  %v2874_v20 = vmul.f32 %v4715_v36, %v2804_v49  ;;  %v2802_v35 = vsel %vm2676_vm2, %v2449_v17, %v2739_v19 }
 0x268   : > { %v2470_v21 = vadd.f32 %v3829_v60, %v4707_v50  ;;  %v2461_v5 = vpop.f32.mrb[77].mxu1  ;;  %v2872_v38 = vmul.f32 %v4715_v36, %v2802_v35  ;;  %v2950_v52 = vsel %vm2282_vm7, %v2871_v37, 0.0 }
 0x269   : > { %v2462_v6 = vadd.f32 %v4707_v50, %v2461_v5  ;;  %2957 = vadd.xlane.f32.xlu0 %v2956_v47  ;;  %v3830_v7 = vpop.f32.mrb[78].mxu1  ;;  %v2959_v33 = vsel %vm2282_vm7, %v2874_v20, 0.0 }
 0x26a   : > { %vm2681_vm3 = vcmp.gt.f32.partialorder %v2470_v21, 0.0  ;;  %v2744_v39 = vmul.f32 0.05, %v2470_v21  ;;  %v2473_v29 = vadd.f32 %v3830_v7, %v4707_v50  ;;  %2960 = vadd.xlane.f32.xlu1 %v2959_v33  ;;  %v2464_v32 = vpop.f32.mrb[79].mxu1  ;;  %v2953_v25 = vsel %vm2282_vm7, %v2872_v38, 0.0 }
 0x26b   : > { %vm2679_vm4 = vcmp.gt.f32.partialorder %v2462_v6, 0.0  ;;  %v2742_v8 = vmul.f32 0.05, %v2462_v6  ;;  %v2465_v40 = vadd.f32 %v4707_v50, %v2464_v32 }
 0x26c   : > { %vm2682_vm5 = vcmp.gt.f32.partialorder %v2473_v29, 0.0  ;;  %v2745_v61 = vmul.f32 0.05, %v2473_v29  ;;  %v2807_v62 = vsel %vm2681_vm3, %v2470_v21, %v2744_v39 }
 0x26d   : > { %vm2680_vm6 = vcmp.gt.f32.partialorder %v2465_v40, 0.0  ;;  %v2743_v63 = vmul.f32 0.05, %v2465_v40  ;;  %2951 = vadd.xlane.f32.xlu0 %v2950_v52  ;;  %v2877_v53 = vmul.f32 %v4715_v36, %v2807_v62  ;;  %v2805_v55 = vsel %vm2679_vm4, %v2462_v6, %v2742_v8 }
 0x26e   : > { %2954 = vadd.xlane.f32.xlu1 %v2953_v25  ;;  %v2808_v34 = vsel %vm2682_vm5, %v2473_v29, %v2745_v61  ;;  %v2875_v27 = vmul.f32 %v4715_v36, %v2805_v55 }
 0x26f   : > { %v3833_v26 = vpop.f32.mrb[80].mxu1  ;;  %v2968_v0 = vsel %vm2282_vm7, %v2877_v53, 0.0  ;;  %v2878_v28 = vmul.f32 %v4715_v36, %v2808_v34  ;;  %v2806_v9 = vsel %vm2680_vm6, %v2465_v40, %v2743_v63 }
 0x270   : > { %v2486_v56 = vadd.f32 %v3833_v26, %v4707_v50  ;;  %v2477_v10 = vpop.f32.mrb[81].mxu1  ;;  %v2876_v11 = vmul.f32 %v4715_v36, %v2806_v9  ;;  %v2962_v22 = vsel %vm2282_vm7, %v2875_v27, 0.0 }
 0x271   : > { %v2478_v54 = vadd.f32 %v4707_v50, %v2477_v10  ;;  %2969 = vadd.xlane.f32.xlu0 %v2968_v0  ;;  %v3834_v31 = vpop.f32.mrb[82].mxu1  ;;  %v2971_v51 = vsel %vm2282_vm7, %v2878_v28, 0.0 }
 0x272   : > { %vm2685_vm8 = vcmp.gt.f32.partialorder %v2486_v56, 0.0  ;;  %v2748_v30 = vmul.f32 0.05, %v2486_v56  ;;  %v2489_v12 = vadd.f32 %v3834_v31, %v4707_v50  ;;  %2972 = vadd.xlane.f32.xlu1 %v2971_v51  ;;  %v2480_v23 = vpop.f32.mrb[83].mxu1  ;;  %v2965_v16 = vsel %vm2282_vm7, %v2876_v11, 0.0 }
 0x273   : > { %vm2683_vm9 = vcmp.gt.f32.partialorder %v2478_v54, 0.0  ;;  %v2746_v24 = vmul.f32 0.05, %v2478_v54  ;;  %v2481_v15 = vadd.f32 %v4707_v50, %v2480_v23 }
 0x274   : > { %vm2686_vm10 = vcmp.gt.f32.partialorder %v2489_v12, 0.0  ;;  %v2749_v45 = vmul.f32 0.05, %v2489_v12  ;;  %v2811_v1 = vsel %vm2685_vm8, %v2486_v56, %v2748_v30 }
 0x275   : > { %vm2684_vm11 = vcmp.gt.f32.partialorder %v2481_v15, 0.0  ;;  %v2747_v46 = vmul.f32 0.05, %v2481_v15  ;;  %2963 = vadd.xlane.f32.xlu0 %v2962_v22  ;;  %v2881_v2 = vmul.f32 %v4715_v36, %v2811_v1  ;;  %v2809_v3 = vsel %vm2683_vm9, %v2478_v54, %v2746_v24 }
 0x276   : > { %2966 = vadd.xlane.f32.xlu1 %v2965_v16  ;;  %v2812_v48 = vsel %vm2686_vm10, %v2489_v12, %v2749_v45  ;;  %v2879_v42 = vmul.f32 %v4715_v36, %v2809_v3 }
 0x277   : > { %v3837_v41 = vpop.f32.mrb[84].mxu1  ;;  %v2980_v57 = vsel %vm2282_vm7, %v2881_v2, 0.0  ;;  %v2882_v13 = vmul.f32 %v4715_v36, %v2812_v48  ;;  %v2810_v14 = vsel %vm2684_vm11, %v2481_v15, %v2747_v46 }
 0x278   : > { %v2502_v17 = vadd.f32 %v3837_v41, %v4707_v50  ;;  %v2493_v4 = vpop.f32.mrb[85].mxu1  ;;  %v2880_v58 = vmul.f32 %v4715_v36, %v2810_v14  ;;  %v2974_v20 = vsel %vm2282_vm7, %v2879_v42, 0.0 }
 0x279   : > { %v2494_v59 = vadd.f32 %v4707_v50, %v2493_v4  ;;  %2981 = vadd.xlane.f32.xlu0 %v2980_v57  ;;  %v3838_v44 = vpop.f32.mrb[86].mxu1  ;;  %v2983_v19 = vsel %vm2282_vm7, %v2882_v13, 0.0 }
 0x27a   : > { %vm2689_vm12 = vcmp.gt.f32.partialorder %v2502_v17, 0.0  ;;  %v2752_v18 = vmul.f32 0.05, %v2502_v17  ;;  %v2505_v43 = vadd.f32 %v3838_v44, %v4707_v50  ;;  %2984 = vadd.xlane.f32.xlu1 %v2983_v19  ;;  %v2496_v49 = vpop.f32.mrb[87].mxu1  ;;  %v2977_v35 = vsel %vm2282_vm7, %v2880_v58, 0.0 }
 0x27b   : > { %vm2687_vm13 = vcmp.gt.f32.partialorder %v2494_v59, 0.0  ;;  %v2750_v60 = vmul.f32 0.05, %v2494_v59  ;;  %v2497_v47 = vadd.f32 %v4707_v50, %v2496_v49 }
 0x27c   : > { %vm2690_vm14 = vcmp.gt.f32.partialorder %v2505_v43, 0.0  ;;  %v2753_v37 = vmul.f32 0.05, %v2505_v43  ;;  %v2815_v21 = vsel %vm2689_vm12, %v2502_v17, %v2752_v18 }
 0x27d   : > { %vm2688_vm15 = vcmp.gt.f32.partialorder %v2497_v47, 0.0  ;;  %v2751_v5 = vmul.f32 0.05, %v2497_v47  ;;  %2975 = vadd.xlane.f32.xlu0 %v2974_v20  ;;  %v2885_v38 = vmul.f32 %v4715_v36, %v2815_v21  ;;  %v2813_v6 = vsel %vm2687_vm13, %v2494_v59, %v2750_v60 }
 0x27e   : > { %2978 = vadd.xlane.f32.xlu1 %v2977_v35  ;;  %v2816_v7 = vsel %vm2690_vm14, %v2505_v43, %v2753_v37  ;;  %v2883_v32 = vmul.f32 %v4715_v36, %v2813_v6 }
 0x27f   : > { %v3841_v33 = vpop.f32.mrb[88].mxu1  ;;  %v2992_v39 = vsel %vm2282_vm7, %v2885_v38, 0.0  ;;  %v2886_v29 = vmul.f32 %v4715_v36, %v2816_v7  ;;  %v2814_v8 = vsel %vm2688_vm15, %v2497_v47, %v2751_v5 }
 0x280   : > { %v2518_v40 = vadd.f32 %v3841_v33, %v4707_v50  ;;  %v2509_v52 = vpop.f32.mrb[89].mxu1  ;;  %v2884_v61 = vmul.f32 %v4715_v36, %v2814_v8  ;;  %v2986_v28 = vsel %vm2282_vm7, %v2883_v32, 0.0 }
 0x281   : > { %v2510_v25 = vadd.f32 %v4707_v50, %v2509_v52  ;;  %2993 = vadd.xlane.f32.xlu0 %v2992_v39  ;;  %v3842_v62 = vpop.f32.mrb[90].mxu1  ;;  %v2995_v63 = vsel %vm2282_vm7, %v2886_v29, 0.0 }
 0x282   : > { %vm2693_vm0 = vcmp.gt.f32.partialorder %v2518_v40, 0.0  ;;  %v2756_v53 = vmul.f32 0.05, %v2518_v40  ;;  %v2521_v55 = vadd.f32 %v3842_v62, %v4707_v50  ;;  %2996 = vadd.xlane.f32.xlu1 %v2995_v63  ;;  %v2512_v34 = vpop.f32.mrb[91].mxu1  ;;  %v2989_v9 = vsel %vm2282_vm7, %v2884_v61, 0.0 }
 0x283   : > { %vm2691_vm1 = vcmp.gt.f32.partialorder %v2510_v25, 0.0  ;;  %v2754_v26 = vmul.f32 0.05, %v2510_v25  ;;  %v2513_v0 = vadd.f32 %v4707_v50, %v2512_v34 }
 0x284   : > { %vm2694_vm2 = vcmp.gt.f32.partialorder %v2521_v55, 0.0  ;;  %v2757_v27 = vmul.f32 0.05, %v2521_v55  ;;  %v2819_v56 = vsel %vm2693_vm0, %v2518_v40, %v2756_v53 }
 0x285   : > { %vm2692_vm3 = vcmp.gt.f32.partialorder %v2513_v0, 0.0  ;;  %v2755_v10 = vmul.f32 0.05, %v2513_v0  ;;  %2987 = vadd.xlane.f32.xlu0 %v2986_v28  ;;  %v2889_v11 = vmul.f32 %v4715_v36, %v2819_v56  ;;  %v2817_v54 = vsel %vm2691_vm1, %v2510_v25, %v2754_v26 }
 0x286   : > { %2990 = vadd.xlane.f32.xlu1 %v2989_v9  ;;  %v2820_v31 = vsel %vm2694_vm2, %v2521_v55, %v2757_v27  ;;  %v2887_v23 = vmul.f32 %v4715_v36, %v2817_v54 }
 0x287   : > { %v3845_v51 = vpop.f32.mrb[92].mxu1  ;;  %v3004_v30 = vsel %vm2282_vm7, %v2889_v11, 0.0  ;;  %v2890_v12 = vmul.f32 %v4715_v36, %v2820_v31  ;;  %v2818_v24 = vsel %vm2692_vm3, %v2513_v0, %v2755_v10 }
 0x288   : > { %v2534_v15 = vadd.f32 %v3845_v51, %v4707_v50  ;;  %v2525_v22 = vpop.f32.mrb[93].mxu1  ;;  %v2888_v45 = vmul.f32 %v4715_v36, %v2818_v24  ;;  %v2998_v13 = vsel %vm2282_vm7, %v2887_v23, 0.0 }
 0x289   : > { %v2526_v16 = vadd.f32 %v4707_v50, %v2525_v22  ;;  %3005 = vadd.xlane.f32.xlu0 %v3004_v30  ;;  %v3846_v1 = vpop.f32.mrb[94].mxu1  ;;  %v3007_v46 = vsel %vm2282_vm7, %v2890_v12, 0.0 }
 0x28a   : > { %vm2697_vm4 = vcmp.gt.f32.partialorder %v2534_v15, 0.0  ;;  %v2760_v2 = vmul.f32 0.05, %v2534_v15  ;;  %v2537_v3 = vadd.f32 %v3846_v1, %v4707_v50  ;;  %3008 = vadd.xlane.f32.xlu1 %v3007_v46  ;;  %v2528_v48 = vpop.f32.mrb[95].mxu1  ;;  %v3001_v14 = vsel %vm2282_vm7, %v2888_v45, 0.0 }
 0x28b   : > { %vm2695_vm5 = vcmp.gt.f32.partialorder %v2526_v16, 0.0  ;;  %v2758_v41 = vmul.f32 0.05, %v2526_v16  ;;  %v2529_v57 = vadd.f32 %v4707_v50, %v2528_v48 }
 0x28c   : > { %vm2698_vm6 = vcmp.gt.f32.partialorder %v2537_v3, 0.0  ;;  %v2761_v42 = vmul.f32 0.05, %v2537_v3  ;;  %v2823_v17 = vsel %vm2697_vm4, %v2534_v15, %v2760_v2 }
 0x28d   : > { %vm2696_vm8 = vcmp.gt.f32.partialorder %v2529_v57, 0.0  ;;  %v2759_v4 = vmul.f32 0.05, %v2529_v57  ;;  %2999 = vadd.xlane.f32.xlu0 %v2998_v13  ;;  %v2893_v58 = vmul.f32 %v4715_v36, %v2823_v17  ;;  %v2821_v59 = vsel %vm2695_vm5, %v2526_v16, %v2758_v41 }
 0x28e   : > { %3002 = vadd.xlane.f32.xlu1 %v3001_v14  ;;  %v2824_v44 = vsel %vm2698_vm6, %v2537_v3, %v2761_v42  ;;  %v2891_v49 = vmul.f32 %v4715_v36, %v2821_v59 }
 0x28f   : > { %v3849_v19 = vpop.f32.mrb[96].mxu1  ;;  %v3016_v18 = vsel %vm2282_vm7, %v2893_v58, 0.0  ;;  %v2894_v43 = vmul.f32 %v4715_v36, %v2824_v44  ;;  %v2822_v60 = vsel %vm2696_vm8, %v2529_v57, %v2759_v4 }
 0x290   : > { %v2550_v47 = vadd.f32 %v3849_v19, %v4707_v50  ;;  %v2541_v20 = vpop.f32.mrb[97].mxu1  ;;  %v2892_v37 = vmul.f32 %v4715_v36, %v2822_v60  ;;  %v3010_v29 = vsel %vm2282_vm7, %v2891_v49, 0.0 }
 0x291   : > { %v2542_v35 = vadd.f32 %v4707_v50, %v2541_v20  ;;  %3017 = vadd.xlane.f32.xlu0 %v3016_v18  ;;  %v3850_v21 = vpop.f32.mrb[98].mxu1  ;;  %v3019_v5 = vsel %vm2282_vm7, %v2894_v43, 0.0 }
 0x292   : > { %vm2701_vm9 = vcmp.gt.f32.partialorder %v2550_v47, 0.0  ;;  %v2764_v38 = vmul.f32 0.05, %v2550_v47  ;;  %v2553_v6 = vadd.f32 %v3850_v21, %v4707_v50  ;;  %3020 = vadd.xlane.f32.xlu1 %v3019_v5  ;;  %v2544_v7 = vpop.f32.mrb[99].mxu1  ;;  %v3013_v8 = vsel %vm2282_vm7, %v2892_v37, 0.0 }
 0x293   : > { %vm2699_vm10 = vcmp.gt.f32.partialorder %v2542_v35, 0.0  ;;  %v2762_v33 = vmul.f32 0.05, %v2542_v35  ;;  %v2545_v39 = vadd.f32 %v4707_v50, %v2544_v7 }
 0x294   : > { %vm2702_vm11 = vcmp.gt.f32.partialorder %v2553_v6, 0.0  ;;  %v2765_v32 = vmul.f32 0.05, %v2553_v6  ;;  %v2827_v40 = vsel %vm2701_vm9, %v2550_v47, %v2764_v38 }
 0x295   : > { %vm2700_vm12 = vcmp.gt.f32.partialorder %v2545_v39, 0.0  ;;  %v2763_v52 = vmul.f32 0.05, %v2545_v39  ;;  %3011 = vadd.xlane.f32.xlu0 %v3010_v29  ;;  %v2897_v61 = vmul.f32 %v4715_v36, %v2827_v40  ;;  %v2825_v25 = vsel %vm2699_vm10, %v2542_v35, %v2762_v33 }
 0x296   : > { %3014 = vadd.xlane.f32.xlu1 %v3013_v8  ;;  %v2828_v62 = vsel %vm2702_vm11, %v2553_v6, %v2765_v32  ;;  %v2895_v34 = vmul.f32 %v4715_v36, %v2825_v25 }
 0x297   : > { %v3853_v63 = vpop.f32.mrb[100].mxu1  ;;  %v3028_v53 = vsel %vm2282_vm7, %v2897_v61, 0.0  ;;  %v2898_v55 = vmul.f32 %v4715_v36, %v2828_v62  ;;  %v2826_v26 = vsel %vm2700_vm12, %v2545_v39, %v2763_v52 }
 0x298   : > { %v2566_v0 = vadd.f32 %v3853_v63, %v4707_v50  ;;  %v2557_v28 = vpop.f32.mrb[101].mxu1  ;;  %v2896_v27 = vmul.f32 %v4715_v36, %v2826_v26  ;;  %v3022_v12 = vsel %vm2282_vm7, %v2895_v34, 0.0 }
 0x299   : > { %v2558_v9 = vadd.f32 %v4707_v50, %v2557_v28  ;;  %3029 = vadd.xlane.f32.xlu0 %v3028_v53  ;;  %v3854_v56 = vpop.f32.mrb[102].mxu1  ;;  %v3031_v10 = vsel %vm2282_vm7, %v2898_v55, 0.0 }
 0x29a   : > { %vm2705_vm13 = vcmp.gt.f32.partialorder %v2566_v0, 0.0  ;;  %v2768_v11 = vmul.f32 0.05, %v2566_v0  ;;  %v2569_v54 = vadd.f32 %v3854_v56, %v4707_v50  ;;  %3032 = vadd.xlane.f32.xlu1 %v3031_v10  ;;  %v2560_v31 = vpop.f32.mrb[103].mxu1  ;;  %v3025_v24 = vsel %vm2282_vm7, %v2896_v27, 0.0 }
 0x29b   : > { %vm2703_vm14 = vcmp.gt.f32.partialorder %v2558_v9, 0.0  ;;  %v2766_v51 = vmul.f32 0.05, %v2558_v9  ;;  %v2561_v30 = vadd.f32 %v4707_v50, %v2560_v31 }
 0x29c   : > { %vm2706_vm15 = vcmp.gt.f32.partialorder %v2569_v54, 0.0  ;;  %v2769_v23 = vmul.f32 0.05, %v2569_v54  ;;  %v2831_v15 = vsel %vm2705_vm13, %v2566_v0, %v2768_v11 }
 0x29d   : > { %vm2704_vm0 = vcmp.gt.f32.partialorder %v2561_v30, 0.0  ;;  %v2767_v22 = vmul.f32 0.05, %v2561_v30  ;;  %3023 = vadd.xlane.f32.xlu0 %v3022_v12  ;;  %v2901_v45 = vmul.f32 %v4715_v36, %v2831_v15  ;;  %v2829_v16 = vsel %vm2703_vm14, %v2558_v9, %v2766_v51 }
 0x29e   : > { %3026 = vadd.xlane.f32.xlu1 %v3025_v24  ;;  %v2832_v1 = vsel %vm2706_vm15, %v2569_v54, %v2769_v23  ;;  %v2899_v48 = vmul.f32 %v4715_v36, %v2829_v16 }
 0x29f   : > { %v3857_v46 = vpop.f32.mrb[104].mxu1  ;;  %v3040_v2 = vsel %vm2282_vm7, %v2901_v45, 0.0  ;;  %v2902_v3 = vmul.f32 %v4715_v36, %v2832_v1  ;;  %v2830_v41 = vsel %vm2704_vm0, %v2561_v30, %v2767_v22 }
 0x2a0   : > { %v2582_v57 = vadd.f32 %v3857_v46, %v4707_v50  ;;  %v2573_v13 = vpop.f32.mrb[105].mxu1  ;;  %v2900_v42 = vmul.f32 %v4715_v36, %v2830_v41  ;;  %v3034_v43 = vsel %vm2282_vm7, %v2899_v48, 0.0 }
 0x2a1   : > { %v2574_v14 = vadd.f32 %v4707_v50, %v2573_v13  ;;  %3041 = vadd.xlane.f32.xlu0 %v3040_v2  ;;  %v3858_v17 = vpop.f32.mrb[106].mxu1  ;;  %v3043_v4 = vsel %vm2282_vm7, %v2902_v3, 0.0 }
 0x2a2   : > { %vm2709_vm1 = vcmp.gt.f32.partialorder %v2582_v57, 0.0  ;;  %v2772_v58 = vmul.f32 0.05, %v2582_v57  ;;  %v2585_v59 = vadd.f32 %v3858_v17, %v4707_v50  ;;  %3044 = vadd.xlane.f32.xlu1 %v3043_v4  ;;  %v2576_v44 = vpop.f32.mrb[107].mxu1  ;;  %v3037_v60 = vsel %vm2282_vm7, %v2900_v42, 0.0 }
 0x2a3   : > { %vm2707_vm2 = vcmp.gt.f32.partialorder %v2574_v14, 0.0  ;;  %v2770_v19 = vmul.f32 0.05, %v2574_v14  ;;  %v2577_v18 = vadd.f32 %v4707_v50, %v2576_v44 }
 0x2a4   : > { %vm2710_vm3 = vcmp.gt.f32.partialorder %v2585_v59, 0.0  ;;  %v2773_v49 = vmul.f32 0.05, %v2585_v59  ;;  %v2835_v47 = vsel %vm2709_vm1, %v2582_v57, %v2772_v58 }
 0x2a5   : > { %vm2708_vm4 = vcmp.gt.f32.partialorder %v2577_v18, 0.0  ;;  %v2771_v20 = vmul.f32 0.05, %v2577_v18  ;;  %3035 = vadd.xlane.f32.xlu0 %v3034_v43  ;;  %v2905_v37 = vmul.f32 %v4715_v36, %v2835_v47  ;;  %v2833_v35 = vsel %vm2707_vm2, %v2574_v14, %v2770_v19 }
 0x2a6   : > { %3038 = vadd.xlane.f32.xlu1 %v3037_v60  ;;  %v2836_v21 = vsel %vm2710_vm3, %v2585_v59, %v2773_v49  ;;  %v2903_v7 = vmul.f32 %v4715_v36, %v2833_v35 }
 0x2a7   : > { %v3861_v5 = vpop.f32.mrb[108].mxu1  ;;  %v3052_v38 = vsel %vm2282_vm7, %v2905_v37, 0.0  ;;  %v2906_v6 = vmul.f32 %v4715_v36, %v2836_v21  ;;  %v2834_v33 = vsel %vm2708_vm4, %v2577_v18, %v2771_v20 }
 0x2a8   : > { %v2598_v39 = vadd.f32 %v3861_v5, %v4707_v50  ;;  %v2589_v29 = vpop.f32.mrb[109].mxu1  ;;  %v2904_v32 = vmul.f32 %v4715_v36, %v2834_v33  ;;  %v3046_v55 = vsel %vm2282_vm7, %v2903_v7, 0.0 }
 0x2a9   : > { %v2590_v8 = vadd.f32 %v4707_v50, %v2589_v29  ;;  %3053 = vadd.xlane.f32.xlu0 %v3052_v38  ;;  %v3862_v40 = vpop.f32.mrb[110].mxu1  ;;  %v3055_v52 = vsel %vm2282_vm7, %v2906_v6, 0.0 }
 0x2aa   : > { %vm2713_vm5 = vcmp.gt.f32.partialorder %v2598_v39, 0.0  ;;  %v2776_v61 = vmul.f32 0.05, %v2598_v39  ;;  %v2601_v25 = vadd.f32 %v3862_v40, %v4707_v50  ;;  %3056 = vadd.xlane.f32.xlu1 %v3055_v52  ;;  %v2592_v62 = vpop.f32.mrb[111].mxu1  ;;  %v3049_v26 = vsel %vm2282_vm7, %v2904_v32, 0.0 }
 0x2ab   : > { %vm2711_vm6 = vcmp.gt.f32.partialorder %v2590_v8, 0.0  ;;  %v2774_v63 = vmul.f32 0.05, %v2590_v8  ;;  %v2593_v53 = vadd.f32 %v4707_v50, %v2592_v62 }
 0x2ac   : > { %vm2714_vm8 = vcmp.gt.f32.partialorder %v2601_v25, 0.0  ;;  %v2777_v34 = vmul.f32 0.05, %v2601_v25  ;;  %v2839_v0 = vsel %vm2713_vm5, %v2598_v39, %v2776_v61 }
 0x2ad   : > { %vm2712_vm9 = vcmp.gt.f32.partialorder %v2593_v53, 0.0  ;;  %v2775_v28 = vmul.f32 0.05, %v2593_v53  ;;  %3047 = vadd.xlane.f32.xlu0 %v3046_v55  ;;  %v2909_v27 = vmul.f32 %v4715_v36, %v2839_v0  ;;  %v2837_v9 = vsel %vm2711_vm6, %v2590_v8, %v2774_v63 }
 0x2ae   : > { %3050 = vadd.xlane.f32.xlu1 %v3049_v26  ;;  %v2840_v56 = vsel %vm2714_vm8, %v2601_v25, %v2777_v34  ;;  %v2907_v31 = vmul.f32 %v4715_v36, %v2837_v9 }
 0x2af   : > { %v3865_v10 = vpop.f32.mrb[112].mxu1  ;;  %v3064_v11 = vsel %vm2282_vm7, %v2909_v27, 0.0  ;;  %v2910_v54 = vmul.f32 %v4715_v36, %v2840_v56  ;;  %v2838_v51 = vsel %vm2712_vm9, %v2593_v53, %v2775_v28 }
 0x2b0   : > { %v2614_v30 = vadd.f32 %v3865_v10, %v4707_v50  ;;  %v2605_v12 = vpop.f32.mrb[113].mxu1  ;;  %v2908_v23 = vmul.f32 %v4715_v36, %v2838_v51  ;;  %v3058_v3 = vsel %vm2282_vm7, %v2907_v31, 0.0 }
 0x2b1   : > { %v2606_v24 = vadd.f32 %v4707_v50, %v2605_v12  ;;  %3065 = vadd.xlane.f32.xlu0 %v3064_v11  ;;  %v3866_v15 = vpop.f32.mrb[114].mxu1  ;;  %v3067_v22 = vsel %vm2282_vm7, %v2910_v54, 0.0 }
 0x2b2   : > { %vm2717_vm10 = vcmp.gt.f32.partialorder %v2614_v30, 0.0  ;;  %v2780_v45 = vmul.f32 0.05, %v2614_v30  ;;  %v2617_v16 = vadd.f32 %v3866_v15, %v4707_v50  ;;  %3068 = vadd.xlane.f32.xlu1 %v3067_v22  ;;  %v2608_v1 = vpop.f32.mrb[115].mxu1  ;;  %v3061_v41 = vsel %vm2282_vm7, %v2908_v23, 0.0 }
 0x2b3   : > { %vm2715_vm11 = vcmp.gt.f32.partialorder %v2606_v24, 0.0  ;;  %v2778_v46 = vmul.f32 0.05, %v2606_v24  ;;  %v2609_v2 = vadd.f32 %v4707_v50, %v2608_v1 }
 0x2b4   : > { %vm2718_vm12 = vcmp.gt.f32.partialorder %v2617_v16, 0.0  ;;  %v2781_v48 = vmul.f32 0.05, %v2617_v16  ;;  %v2843_v57 = vsel %vm2717_vm10, %v2614_v30, %v2780_v45  ;;  %vm3185_vm10 = vcmask 7168  }
 0x2b5   : > { %vm2716_vm13 = vcmp.gt.f32.partialorder %v2609_v2, 0.0  ;;  %v2779_v13 = vmul.f32 0.05, %v2609_v2  ;;  %3059 = vadd.xlane.f32.xlu0 %v3058_v3  ;;  %v2913_v42 = vmul.f32 %v4715_v36, %v2843_v57  ;;  %v2841_v14 = vsel %vm2715_vm11, %v2606_v24, %v2778_v46 }
 0x2b6   : > { %3062 = vadd.xlane.f32.xlu1 %v3061_v41  ;;  %v2844_v17 = vsel %vm2718_vm12, %v2617_v16, %v2781_v48  ;;  %v2911_v44 = vmul.f32 %v4715_v36, %v2841_v14 }
 0x2b7   : > { %v3869_v4 = vpop.f32.mrb[116].mxu1  ;;  %v3076_v58 = vsel %vm2282_vm7, %v2913_v42, 0.0  ;;  %v2914_v59 = vmul.f32 %v4715_v36, %v2844_v17  ;;  %v2842_v19 = vsel %vm2716_vm13, %v2609_v2, %v2779_v13 }
 0x2b8   : > { %v2630_v18 = vadd.f32 %v3869_v4, %v4707_v50  ;;  %v2621_v43 = vpop.f32.mrb[117].mxu1  ;;  %v2912_v49 = vmul.f32 %v4715_v36, %v2842_v19  ;;  %v3070_v6 = vsel %vm2282_vm7, %v2911_v44, 0.0 }
 0x2b9   : > { %v2622_v60 = vadd.f32 %v4707_v50, %v2621_v43  ;;  %3077 = vadd.xlane.f32.xlu0 %v3076_v58  ;;  %v3870_v47 = vpop.f32.mrb[118].mxu1  ;;  %v3079_v20 = vsel %vm2282_vm7, %v2914_v59, 0.0 }
 0x2ba   : > { %vm2721_vm14 = vcmp.gt.f32.partialorder %v2630_v18, 0.0  ;;  %v2784_v37 = vmul.f32 0.05, %v2630_v18  ;;  %v2633_v35 = vadd.f32 %v3870_v47, %v4707_v50  ;;  %3080 = vadd.xlane.f32.xlu1 %v3079_v20  ;;  %v2624_v21 = vpop.f32.mrb[119].mxu1  ;;  %v3073_v33 = vsel %vm2282_vm7, %v2912_v49, 0.0 }
 0x2bb   : > { %vm2719_vm15 = vcmp.gt.f32.partialorder %v2622_v60, 0.0  ;;  %v2782_v5 = vmul.f32 0.05, %v2622_v60  ;;  %v2625_v38 = vadd.f32 %v4707_v50, %v2624_v21 }
 0x2bc   : > { %vm2722_vm0 = vcmp.gt.f32.partialorder %v2633_v35, 0.0  ;;  %v2785_v7 = vmul.f32 0.05, %v2633_v35  ;;  %v2847_v39 = vsel %vm2721_vm14, %v2630_v18, %v2784_v37 }
 0x2bd   : > { %vm2720_vm1 = vcmp.gt.f32.partialorder %v2625_v38, 0.0  ;;  %v2783_v29 = vmul.f32 0.05, %v2625_v38  ;;  %3071 = vadd.xlane.f32.xlu0 %v3070_v6  ;;  %v2917_v32 = vmul.f32 %v4715_v36, %v2847_v39  ;;  %v2845_v8 = vsel %vm2719_vm15, %v2622_v60, %v2782_v5 }
 0x2be   : > { %3074 = vadd.xlane.f32.xlu1 %v3073_v33  ;;  %v2848_v40 = vsel %vm2722_vm0, %v2633_v35, %v2785_v7  ;;  %v2915_v62 = vmul.f32 %v4715_v36, %v2845_v8  ;;  %v4903_v35 = vld [vmem:[#allocation2] ss:$0 sm:$0xff] }
 0x2bf   : > { %v3873_v52 = vpop.f32.mrb[120].mxu1  ;;  %v3088_v61 = vsel %vm2282_vm7, %v2917_v32, 0.0  ;;  %v2918_v25 = vmul.f32 %v4715_v36, %v2848_v40  ;;  %v2846_v63 = vsel %vm2720_vm1, %v2625_v38, %v2783_v29 }
 0x2c0   : > { %v2646_v53 = vadd.f32 %v3873_v52, %v4707_v50  ;;  %v2637_v55 = vpop.f32.mrb[121].mxu1  ;;  %v2916_v34 = vmul.f32 %v4715_v36, %v2846_v63  ;;  %v3082_v54 = vsel %vm2282_vm7, %v2915_v62, 0.0 }
 0x2c1   : > { %v2638_v26 = vadd.f32 %v4707_v50, %v2637_v55  ;;  %3089 = vadd.xlane.f32.xlu0 %v3088_v61  ;;  %v3874_v0 = vpop.f32.mrb[122].mxu1  ;;  %v3091_v28 = vsel %vm2282_vm7, %v2918_v25, 0.0 }
 0x2c2   : > { %vm2725_vm2 = vcmp.gt.f32.partialorder %v2646_v53, 0.0  ;;  %v2788_v27 = vmul.f32 0.05, %v2646_v53  ;;  %v2649_v9 = vadd.f32 %v3874_v0, %v4707_v50  ;;  %3092 = vadd.xlane.f32.xlu1 %v3091_v28  ;;  %v2640_v56 = vpop.f32.mrb[123].mxu1  ;;  %v3085_v51 = vsel %vm2282_vm7, %v2916_v34, 0.0 }
 0x2c3   : > { %vm2723_vm3 = vcmp.gt.f32.partialorder %v2638_v26, 0.0  ;;  %v2786_v10 = vmul.f32 0.05, %v2638_v26  ;;  %v2641_v11 = vadd.f32 %v4707_v50, %v2640_v56 }
 0x2c4   : > { %vm2726_vm4 = vcmp.gt.f32.partialorder %v2649_v9, 0.0  ;;  %v2789_v31 = vmul.f32 0.05, %v2649_v9  ;;  %v2851_v30 = vsel %vm2725_vm2, %v2646_v53, %v2788_v27 }
 0x2c5   : > { %vm2724_vm5 = vcmp.gt.f32.partialorder %v2641_v11, 0.0  ;;  %v2787_v12 = vmul.f32 0.05, %v2641_v11  ;;  %3083 = vadd.xlane.f32.xlu0 %v3082_v54  ;;  %v2921_v23 = vmul.f32 %v4715_v36, %v2851_v30  ;;  %v2849_v24 = vsel %vm2723_vm3, %v2638_v26, %v2786_v10 }
 0x2c6   : > { %3086 = vadd.xlane.f32.xlu1 %v3085_v51  ;;  %v2852_v15 = vsel %vm2726_vm4, %v2649_v9, %v2789_v31  ;;  %v2919_v3 = vmul.f32 %v4715_v36, %v2849_v24 }
 0x2c7   : > { %v3877_v22 = vpop.f32.mrb[124].mxu1  ;;  %v3100_v45 = vsel %vm2282_vm7, %v2921_v23, 0.0  ;;  %v2922_v16 = vmul.f32 %v4715_v36, %v2852_v15  ;;  %v2850_v1 = vsel %vm2724_vm5, %v2641_v11, %v2787_v12 }
 0x2c8   : > { %v2662_v46 = vadd.f32 %v3877_v22, %v4707_v50  ;;  %v2653_v2 = vpop.f32.mrb[125].mxu1  ;;  %v2920_v48 = vmul.f32 %v4715_v36, %v2850_v1  ;;  %v3094_v58 = vsel %vm2282_vm7, %v2919_v3, 0.0 }
 0x2c9   : > { %v2654_v41 = vadd.f32 %v4707_v50, %v2653_v2  ;;  %3101 = vadd.xlane.f32.xlu0 %v3100_v45  ;;  %v3878_v57 = vpop.f32.mrb[126].mxu1  ;;  %v3103_v13 = vsel %vm2282_vm7, %v2922_v16, 0.0 }
 0x2ca   : > { %vm2729_vm6 = vcmp.gt.f32.partialorder %v2662_v46, 0.0  ;;  %v2792_v42 = vmul.f32 0.05, %v2662_v46  ;;  %3104 = vadd.xlane.f32.xlu1 %v3103_v13  ;;  %v2656_v14 = vpop.f32.mrb[127].mxu1  ;;  %v3097_v59 = vsel %vm2282_vm7, %v2920_v48, 0.0 }
 0x2cb   : > { %vm2727_vm8 = vcmp.gt.f32.partialorder %v2654_v41, 0.0  ;;  %v2790_v17 = vmul.f32 0.05, %v2654_v41  ;;  %v2657_v4 = vadd.f32 %v4707_v50, %v2656_v14 }
 0x2cc   : > { %v2855_v18 = vsel %vm2729_vm6, %v2662_v46, %v2792_v42 }
 0x2cd   : > { %vm2728_vm9 = vcmp.gt.f32.partialorder %v2657_v4, 0.0  ;;  %v2791_v44 = vmul.f32 0.05, %v2657_v4  ;;  %3095 = vadd.xlane.f32.xlu0 %v3094_v58  ;;  %v2853_v19 = vsel %vm2727_vm8, %v2654_v41, %v2790_v17  ;;  %v2925_v50 = vmul.f32 %v4715_v36, %v2855_v18 }
 0x2ce   : > { %3098 = vadd.xlane.f32.xlu1 %v3097_v59  ;;  %v2923_v43 = vmul.f32 %v4715_v36, %v2853_v19 }
 0x2cf   : > { %v2854_v49 = vsel %vm2728_vm9, %v2657_v4, %v2791_v44  ;;  %v3112_v37 = vsel %vm2282_vm7, %v2925_v50, 0.0 }
 0x2d0   : > { %v3106_v60 = vsel %vm2282_vm7, %v2923_v43, 0.0  ;;  %v2924_v47 = vmul.f32 %v4715_v36, %v2854_v49 }
 0x2d1   : > { %3107 = vadd.xlane.f32.xlu0 %v3106_v60 }
 0x2d2   : > { %v3109_v20 = vsel %vm2282_vm7, %v2924_v47, 0.0 }
 0x2d3   : > { %3110 = vadd.xlane.f32.xlu1 %v3109_v20 }
 0x2d5   : > { %3113 = vadd.xlane.f32.xlu0 %v3112_v37 }
 0x2e5   : > { %v2934_v36 = vpop.xlane.xlu1 %2933 }
 0x2e6   : > { %v3124_v21 = vadd.f32 %v4903_v35, %v2934_v36  ;;  %v2928_v5 = vpop.xlane.xlu0 %2927 }
 0x2e7   : > { %v3122_v38 = vadd.f32 %v4903_v35, %v2928_v5 }
 0x2e8   : > { %3188 = vst.msk [vmem:[%s4909_s14 + $0x10] sm:$0xff] %vm3185_vm10, %v3124_v21 }
 0x2e9   : > { %3186 = vst.msk [vmem:[%s4909_s14] sm:$0xff] %vm3185_vm10, %v3122_v38  ;;  %v2937_v6 = vpop.xlane.xlu1 %2936 }
 0x2ea   : > { %v3125_v7 = vadd.f32 %v4903_v35, %v2937_v6  ;;  %v2931_v33 = vpop.xlane.xlu0 %2930 }
 0x2eb   : > { %v3123_v39 = vadd.f32 %v4903_v35, %v2931_v33 }
 0x2ec   : > { %3189 = vst.msk [vmem:[%s4909_s14 + $0x18] sm:$0xff] %vm3185_vm10, %v3125_v7 }
 0x2ed   : > { %3187 = vst.msk [vmem:[%s4909_s14 + $0x8] sm:$0xff] %vm3185_vm10, %v3123_v39 }
 0x2ee   : > { %v2946_v29 = vpop.xlane.xlu0 %2945 }
 0x2ef   : > { %v3128_v32 = vadd.f32 %v4903_v35, %v2946_v29  ;;  %v2949_v8 = vpop.xlane.xlu1 %2948 }
 0x2f0   : > { %v3129_v40 = vadd.f32 %v4903_v35, %v2949_v8 }
 0x2f1   : > { %3192 = vst.msk [vmem:[%s4909_s14 + $0x30] sm:$0xff] %vm3185_vm10, %v3128_v32 }
 0x2f2   : > { %3193 = vst.msk [vmem:[%s4909_s14 + $0x38] sm:$0xff] %vm3185_vm10, %v3129_v40  ;;  %v2940_v52 = vpop.xlane.xlu0 %2939 }
 0x2f3   : > { %v3126_v61 = vadd.f32 %v4903_v35, %v2940_v52  ;;  %v2943_v25 = vpop.xlane.xlu1 %2942 }
 0x2f4   : > { %v3127_v62 = vadd.f32 %v4903_v35, %v2943_v25 }
 0x2f5   : > { %3190 = vst.msk [vmem:[%s4909_s14 + $0x20] sm:$0xff] %vm3185_vm10, %v3126_v61 }
 0x2f6   : > { %3191 = vst.msk [vmem:[%s4909_s14 + $0x28] sm:$0xff] %vm3185_vm10, %v3127_v62  ;;  %v2958_v63 = vpop.xlane.xlu0 %2957 }
 0x2f7   : > { %v3132_v53 = vadd.f32 %v4903_v35, %v2958_v63  ;;  %v2961_v55 = vpop.xlane.xlu1 %2960 }
 0x2f8   : > { %v3133_v34 = vadd.f32 %v4903_v35, %v2961_v55 }
 0x2f9   : > { %3196 = vst.msk [vmem:[%s4909_s14 + $0x50] sm:$0xff] %vm3185_vm10, %v3132_v53 }
 0x2fa   : > { %3197 = vst.msk [vmem:[%s4909_s14 + $0x58] sm:$0xff] %vm3185_vm10, %v3133_v34  ;;  %v2952_v26 = vpop.xlane.xlu0 %2951 }
 0x2fb   : > { %v3130_v0 = vadd.f32 %v4903_v35, %v2952_v26  ;;  %v2955_v28 = vpop.xlane.xlu1 %2954 }
 0x2fc   : > { %v3131_v27 = vadd.f32 %v4903_v35, %v2955_v28 }
 0x2fd   : > { %3194 = vst.msk [vmem:[%s4909_s14 + $0x40] sm:$0xff] %vm3185_vm10, %v3130_v0 }
 0x2fe   : > { %3195 = vst.msk [vmem:[%s4909_s14 + $0x48] sm:$0xff] %vm3185_vm10, %v3131_v27  ;;  %v2970_v9 = vpop.xlane.xlu0 %2969 }
 0x2ff   : > { %v3136_v56 = vadd.f32 %v4903_v35, %v2970_v9  ;;  %v2973_v10 = vpop.xlane.xlu1 %2972 }
 0x300   : > { %v3137_v11 = vadd.f32 %v4903_v35, %v2973_v10 }
 0x301   : > { %3200 = vst.msk [vmem:[%s4909_s14 + $0x70] sm:$0xff] %vm3185_vm10, %v3136_v56 }
 0x302   : > { %3201 = vst.msk [vmem:[%s4909_s14 + $0x78] sm:$0xff] %vm3185_vm10, %v3137_v11  ;;  %v2964_v54 = vpop.xlane.xlu0 %2963 }
 0x303   : > { %v3134_v31 = vadd.f32 %v4903_v35, %v2964_v54  ;;  %v2967_v51 = vpop.xlane.xlu1 %2966 }
 0x304   : > { %v3135_v30 = vadd.f32 %v4903_v35, %v2967_v51 }
 0x305   : > { %3198 = vst.msk [vmem:[%s4909_s14 + $0x60] sm:$0xff] %vm3185_vm10, %v3134_v31 }
 0x306   : > { %3199 = vst.msk [vmem:[%s4909_s14 + $0x68] sm:$0xff] %vm3185_vm10, %v3135_v30  ;;  %v2982_v12 = vpop.xlane.xlu0 %2981 }
 0x307   : > { %v3140_v23 = vadd.f32 %v4903_v35, %v2982_v12  ;;  %v2985_v24 = vpop.xlane.xlu1 %2984 }
 0x308   : > { %v3141_v15 = vadd.f32 %v4903_v35, %v2985_v24 }
 0x309   : > { %3204 = vst.msk [vmem:[%s4909_s14 + $0x90] sm:$0xff] %vm3185_vm10, %v3140_v23 }
 0x30a   : > { %3205 = vst.msk [vmem:[%s4909_s14 + $0x98] sm:$0xff] %vm3185_vm10, %v3141_v15  ;;  %v2976_v22 = vpop.xlane.xlu0 %2975 }
 0x30b   : > { %v3138_v45 = vadd.f32 %v4903_v35, %v2976_v22  ;;  %v2979_v16 = vpop.xlane.xlu1 %2978 }
 0x30c   : > { %v3139_v1 = vadd.f32 %v4903_v35, %v2979_v16 }
 0x30d   : > { %3202 = vst.msk [vmem:[%s4909_s14 + $0x80] sm:$0xff] %vm3185_vm10, %v3138_v45 }
 0x30e   : > { %3203 = vst.msk [vmem:[%s4909_s14 + $0x88] sm:$0xff] %vm3185_vm10, %v3139_v1  ;;  %v2994_v46 = vpop.xlane.xlu0 %2993 }
 0x30f   : > { %v3144_v2 = vadd.f32 %v4903_v35, %v2994_v46  ;;  %v2997_v3 = vpop.xlane.xlu1 %2996 }
 0x310   : > { %v3145_v48 = vadd.f32 %v4903_v35, %v2997_v3 }
 0x311   : > { %3208 = vst.msk [vmem:[%s4909_s14 + $0xb0] sm:$0xff] %vm3185_vm10, %v3144_v2 }
 0x312   : > { %3209 = vst.msk [vmem:[%s4909_s14 + $0xb8] sm:$0xff] %vm3185_vm10, %v3145_v48  ;;  %v2988_v41 = vpop.xlane.xlu0 %2987 }
 0x313   : > { %v3142_v57 = vadd.f32 %v4903_v35, %v2988_v41  ;;  %v2991_v13 = vpop.xlane.xlu1 %2990 }
 0x314   : > { %v3143_v42 = vadd.f32 %v4903_v35, %v2991_v13 }
 0x315   : > { %3206 = vst.msk [vmem:[%s4909_s14 + $0xa0] sm:$0xff] %vm3185_vm10, %v3142_v57 }
 0x316   : > { %3207 = vst.msk [vmem:[%s4909_s14 + $0xa8] sm:$0xff] %vm3185_vm10, %v3143_v42  ;;  %v3006_v14 = vpop.xlane.xlu0 %3005 }
 0x317   : > { %v3148_v17 = vadd.f32 %v4903_v35, %v3006_v14  ;;  %v3009_v4 = vpop.xlane.xlu1 %3008 }
 0x318   : > { %v3149_v58 = vadd.f32 %v4903_v35, %v3009_v4 }
 0x319   : > { %3212 = vst.msk [vmem:[%s4909_s14 + $0xd0] sm:$0xff] %vm3185_vm10, %v3148_v17 }
 0x31a   : > { %3213 = vst.msk [vmem:[%s4909_s14 + $0xd8] sm:$0xff] %vm3185_vm10, %v3149_v58  ;;  %v3000_v59 = vpop.xlane.xlu0 %2999 }
 0x31b   : > { %v3146_v44 = vadd.f32 %v4903_v35, %v3000_v59  ;;  %v3003_v19 = vpop.xlane.xlu1 %3002 }
 0x31c   : > { %v3147_v18 = vadd.f32 %v4903_v35, %v3003_v19 }
 0x31d   : > { %3210 = vst.msk [vmem:[%s4909_s14 + $0xc0] sm:$0xff] %vm3185_vm10, %v3146_v44 }
 0x31e   : > { %3211 = vst.msk [vmem:[%s4909_s14 + $0xc8] sm:$0xff] %vm3185_vm10, %v3147_v18  ;;  %v3018_v43 = vpop.xlane.xlu0 %3017 }
 0x31f   : > { %v3152_v49 = vadd.f32 %v4903_v35, %v3018_v43  ;;  %v3021_v60 = vpop.xlane.xlu1 %3020 }
 0x320   : > { %v3153_v47 = vadd.f32 %v4903_v35, %v3021_v60 }
 0x321   : > { %3216 = vst.msk [vmem:[%s4909_s14 + $0xf0] sm:$0xff] %vm3185_vm10, %v3152_v49 }
 0x322   : > { %3217 = vst.msk [vmem:[%s4909_s14 + $0xf8] sm:$0xff] %vm3185_vm10, %v3153_v47  ;;  %v3012_v50 = vpop.xlane.xlu0 %3011 }
 0x323   : > { %v3150_v20 = vadd.f32 %v4903_v35, %v3012_v50  ;;  %v3015_v37 = vpop.xlane.xlu1 %3014 }
 0x324   : > { %v3151_v36 = vadd.f32 %v4903_v35, %v3015_v37 }
 0x325   : > { %3214 = vst.msk [vmem:[%s4909_s14 + $0xe0] sm:$0xff] %vm3185_vm10, %v3150_v20 }
 0x326   : > { %3215 = vst.msk [vmem:[%s4909_s14 + $0xe8] sm:$0xff] %vm3185_vm10, %v3151_v36  ;;  %v3030_v21 = vpop.xlane.xlu0 %3029 }
 0x327   : > { %v3156_v5 = vadd.f32 %v4903_v35, %v3030_v21  ;;  %v3033_v38 = vpop.xlane.xlu1 %3032 }
 0x328   : > { %v3157_v6 = vadd.f32 %v4903_v35, %v3033_v38 }
 0x329   : > { %3220 = vst.msk [vmem:[%s4909_s14 + $0x110] sm:$0xff] %vm3185_vm10, %v3156_v5 }
 0x32a   : > { %3221 = vst.msk [vmem:[%s4909_s14 + $0x118] sm:$0xff] %vm3185_vm10, %v3157_v6  ;;  %v3024_v7 = vpop.xlane.xlu0 %3023 }
 0x32b   : > { %v3154_v33 = vadd.f32 %v4903_v35, %v3024_v7  ;;  %v3027_v39 = vpop.xlane.xlu1 %3026 }
 0x32c   : > { %v3155_v29 = vadd.f32 %v4903_v35, %v3027_v39 }
 0x32d   : > { %3218 = vst.msk [vmem:[%s4909_s14 + $0x100] sm:$0xff] %vm3185_vm10, %v3154_v33 }
 0x32e   : > { %3219 = vst.msk [vmem:[%s4909_s14 + $0x108] sm:$0xff] %vm3185_vm10, %v3155_v29  ;;  %v3042_v32 = vpop.xlane.xlu0 %3041 }
 0x32f   : > { %v3160_v8 = vadd.f32 %v4903_v35, %v3042_v32  ;;  %v3045_v40 = vpop.xlane.xlu1 %3044 }
 0x330   : > { %v3161_v52 = vadd.f32 %v4903_v35, %v3045_v40 }
 0x331   : > { %3224 = vst.msk [vmem:[%s4909_s14 + $0x130] sm:$0xff] %vm3185_vm10, %v3160_v8 }
 0x332   : > { %3225 = vst.msk [vmem:[%s4909_s14 + $0x138] sm:$0xff] %vm3185_vm10, %v3161_v52  ;;  %v3036_v61 = vpop.xlane.xlu0 %3035 }
 0x333   : > { %v3158_v25 = vadd.f32 %v4903_v35, %v3036_v61  ;;  %v3039_v62 = vpop.xlane.xlu1 %3038 }
 0x334   : > { %v3159_v63 = vadd.f32 %v4903_v35, %v3039_v62 }
 0x335   : > { %3222 = vst.msk [vmem:[%s4909_s14 + $0x120] sm:$0xff] %vm3185_vm10, %v3158_v25 }
 0x336   : > { %3223 = vst.msk [vmem:[%s4909_s14 + $0x128] sm:$0xff] %vm3185_vm10, %v3159_v63  ;;  %v3054_v53 = vpop.xlane.xlu0 %3053 }
 0x337   : > { %v3164_v55 = vadd.f32 %v4903_v35, %v3054_v53  ;;  %v3057_v34 = vpop.xlane.xlu1 %3056 }
 0x338   : > { %v3165_v26 = vadd.f32 %v4903_v35, %v3057_v34 }
 0x339   : > { %3228 = vst.msk [vmem:[%s4909_s14 + $0x150] sm:$0xff] %vm3185_vm10, %v3164_v55 }
 0x33a   : > { %3229 = vst.msk [vmem:[%s4909_s14 + $0x158] sm:$0xff] %vm3185_vm10, %v3165_v26  ;;  %v3048_v0 = vpop.xlane.xlu0 %3047 }
 0x33b   : > { %v3162_v28 = vadd.f32 %v4903_v35, %v3048_v0  ;;  %v3051_v27 = vpop.xlane.xlu1 %3050 }
 0x33c   : > { %v3163_v9 = vadd.f32 %v4903_v35, %v3051_v27 }
 0x33d   : > { %3226 = vst.msk [vmem:[%s4909_s14 + $0x140] sm:$0xff] %vm3185_vm10, %v3162_v28 }
 0x33e   : > { %3227 = vst.msk [vmem:[%s4909_s14 + $0x148] sm:$0xff] %vm3185_vm10, %v3163_v9  ;;  %v3066_v56 = vpop.xlane.xlu0 %3065 }
 0x33f   : > { %v3168_v10 = vadd.f32 %v4903_v35, %v3066_v56  ;;  %v3069_v11 = vpop.xlane.xlu1 %3068 }
 0x340   : > { %v3169_v54 = vadd.f32 %v4903_v35, %v3069_v11 }
 0x341   : > { %3232 = vst.msk [vmem:[%s4909_s14 + $0x170] sm:$0xff] %vm3185_vm10, %v3168_v10 }
 0x342   : > { %3233 = vst.msk [vmem:[%s4909_s14 + $0x178] sm:$0xff] %vm3185_vm10, %v3169_v54  ;;  %v3060_v31 = vpop.xlane.xlu0 %3059 }
 0x343   : > { %v3166_v51 = vadd.f32 %v4903_v35, %v3060_v31  ;;  %v3063_v30 = vpop.xlane.xlu1 %3062 }
 0x344   : > { %v3167_v12 = vadd.f32 %v4903_v35, %v3063_v30 }
 0x345   : > { %3230 = vst.msk [vmem:[%s4909_s14 + $0x160] sm:$0xff] %vm3185_vm10, %v3166_v51 }
 0x346   : > { %3231 = vst.msk [vmem:[%s4909_s14 + $0x168] sm:$0xff] %vm3185_vm10, %v3167_v12  ;;  %v3078_v23 = vpop.xlane.xlu0 %3077 }
 0x347   : > { %v3172_v24 = vadd.f32 %v4903_v35, %v3078_v23  ;;  %v3081_v15 = vpop.xlane.xlu1 %3080 }
 0x348   : > { %v3173_v22 = vadd.f32 %v4903_v35, %v3081_v15 }
 0x349   : > { %3236 = vst.msk [vmem:[%s4909_s14 + $0x190] sm:$0xff] %vm3185_vm10, %v3172_v24 }
 0x34a   : > { %3237 = vst.msk [vmem:[%s4909_s14 + $0x198] sm:$0xff] %vm3185_vm10, %v3173_v22  ;;  %v3072_v45 = vpop.xlane.xlu0 %3071 }
 0x34b   : > { %v3170_v16 = vadd.f32 %v4903_v35, %v3072_v45  ;;  %v3075_v1 = vpop.xlane.xlu1 %3074 }
 0x34c   : > { %v3171_v46 = vadd.f32 %v4903_v35, %v3075_v1 }
 0x34d   : > { %3234 = vst.msk [vmem:[%s4909_s14 + $0x180] sm:$0xff] %vm3185_vm10, %v3170_v16 }
 0x34e   : > { %3235 = vst.msk [vmem:[%s4909_s14 + $0x188] sm:$0xff] %vm3185_vm10, %v3171_v46  ;;  %v3090_v2 = vpop.xlane.xlu0 %3089 }
 0x34f   : > { %v3176_v3 = vadd.f32 %v4903_v35, %v3090_v2  ;;  %v3093_v48 = vpop.xlane.xlu1 %3092 }
 0x350   : > { %v3177_v41 = vadd.f32 %v4903_v35, %v3093_v48 }
 0x351   : > { %3240 = vst.msk [vmem:[%s4909_s14 + $0x1b0] sm:$0xff] %vm3185_vm10, %v3176_v3 }
 0x352   : > { %3241 = vst.msk [vmem:[%s4909_s14 + $0x1b8] sm:$0xff] %vm3185_vm10, %v3177_v41  ;;  %v3084_v57 = vpop.xlane.xlu0 %3083 }
 0x353   : > { %v3174_v13 = vadd.f32 %v4903_v35, %v3084_v57  ;;  %v3087_v42 = vpop.xlane.xlu1 %3086 }
 0x354   : > { %v3175_v14 = vadd.f32 %v4903_v35, %v3087_v42 }
 0x355   : > { %3238 = vst.msk [vmem:[%s4909_s14 + $0x1a0] sm:$0xff] %vm3185_vm10, %v3174_v13 }
 0x356   : > { %3239 = vst.msk [vmem:[%s4909_s14 + $0x1a8] sm:$0xff] %vm3185_vm10, %v3175_v14  ;;  %v3102_v17 = vpop.xlane.xlu0 %3101 }
 0x357   : > { %v3180_v4 = vadd.f32 %v4903_v35, %v3102_v17  ;;  %v3105_v58 = vpop.xlane.xlu1 %3104 }
 0x358   : > { %v3181_v59 = vadd.f32 %v4903_v35, %v3105_v58 }
 0x359   : > { %3244 = vst.msk [vmem:[%s4909_s14 + $0x1d0] sm:$0xff] %vm3185_vm10, %v3180_v4 }
 0x35a   : > { %3245 = vst.msk [vmem:[%s4909_s14 + $0x1d8] sm:$0xff] %vm3185_vm10, %v3181_v59  ;;  %v3096_v44 = vpop.xlane.xlu0 %3095 }
 0x35b   : > { %v3178_v19 = vadd.f32 %v4903_v35, %v3096_v44  ;;  %v3099_v18 = vpop.xlane.xlu1 %3098 }
 0x35c   : > { %v3179_v43 = vadd.f32 %v4903_v35, %v3099_v18 }
 0x35d   : > { %3242 = vst.msk [vmem:[%s4909_s14 + $0x1c0] sm:$0xff] %vm3185_vm10, %v3178_v19 }
 0x35e   : > { %3243 = vst.msk [vmem:[%s4909_s14 + $0x1c8] sm:$0xff] %vm3185_vm10, %v3179_v43  ;;  %v3108_v49 = vpop.xlane.xlu0 %3107 }
 0x35f   : > { %v3182_v60 = vadd.f32 %v4903_v35, %v3108_v49 }
 0x360   : > { %v3111_v47 = vpop.xlane.xlu1 %3110 }
 0x361   : > { %3246 = vst.msk [vmem:[%s4909_s14 + $0x1e0] sm:$0xff] %vm3185_vm10, %v3182_v60  ;;  %v3183_v50 = vadd.f32 %v4903_v35, %v3111_v47 }
 0x362   : > { %v3114_v20 = vpop.xlane.xlu0 %3113 }
 0x363   : > { %3247 = vst.msk [vmem:[%s4909_s14 + $0x1e8] sm:$0xff] %vm3185_vm10, %v3183_v50  ;;  %v3184_v37 = vadd.f32 %v4903_v35, %v3114_v20 }
 0x365   : > { %3248 = vst.msk [vmem:[%s4909_s14 + $0x1f0] sm:$0xff] %vm3185_vm10, %v3184_v37 }
 0x366 PF: > { %s23_s19 = sadd.s32 1, %s4019_s19  }
 0x367   : > { %p20_p4 = scmp.ge.s32.totalorder %s23_s19, 4  }
 0x369   :  { %22 = sbr.rel (!%p20_p4) target bundleno = 3 (0x3), region = 100 }

</bundles_post_ra>
